<compile_context>
chip_gen: v6e
topology: v6e:2x2x1
jax: 0.10.0
libtpu: 0.0.40
codegen_flags: <defaults>
</compile_context>

<pallas_src>
import functools

import jax
import jax.numpy as jnp
from jax import lax
from jax.experimental import pallas as pl
from jax.experimental.pallas import tpu as pltpu

N = 12          # number of neurons (module default)
N_PAD = 128     # lane padding
S_ROWS = 8      # padded state rows (v, g, theta_s, theta_v, I_additive, pad*3)
P_ROWS = 16     # padded derived-parameter rows
GROUP = 8       # statically unrolled steps per fori iteration / spike-store batch

# Rows of the packed derived parameter matrix.
_A, _VM, _C, _FV, _D, _DTS, _BS1, _AV, _BV, _THC, _FI1, _FI, _GD = range(13)


def _fold_params(params):
    """Fold the 13 raw GLIF parameter rows into per-step affine constants.

    params rows: G, E_L, f_v, f_I, delta_theta_s, b_s, a_v, b_v, theta_inf,
                 delta_V, tau_m, tau_g, norm_R.
    Shared by the kernel wrapper and the pure-JAX reference so both use
    bitwise-identical constants.
    """
    G, E_L, f_v, f_I, dts = params[0], params[1], params[2], params[3], params[4]
    b_s, a_v, b_v, t_inf, dV = params[5], params[6], params[7], params[8], params[9]
    tau_m, tau_g, normR = params[10], params[11], params[12]
    A = G * E_L / tau_m
    VM = 1.0 - G / tau_m
    C = normR / tau_m
    Dc = E_L * (1.0 - f_v) - dV
    BS1 = 1.0 - b_s
    THC = b_v * t_inf - a_v * E_L
    FI1 = 1.0 - f_I
    GD = 1.0 - 1.0 / tau_g
    return (A, VM, C, f_v, Dc, dts, BS1, a_v, b_v, THC, FI1, f_I, GD)


def glif_seq_kernel(w_ref, params_ref, state0_ref, iext_ref,
                    spiked_ref, statef_ref):
    t_tile = iext_ref.shape[0]
    n_groups = t_tile // GROUP

    # Hidden state lives in the resident (constant-index) output block.
    @pl.when(pl.program_id(0) == 0)
    def _init():
        statef_ref[...] = state0_ref[...]

    # Folded per-neuron constants, one (1, N_PAD) row each.
    P = params_ref[...]                         # (P_ROWS, N_PAD)
    A   = P[_A:_A + 1, :]
    VM  = P[_VM:_VM + 1, :]
    C   = P[_C:_C + 1, :]
    f_v = P[_FV:_FV + 1, :]
    Dc  = P[_D:_D + 1, :]
    dts = P[_DTS:_DTS + 1, :]
    BS1 = P[_BS1:_BS1 + 1, :]
    a_v = P[_AV:_AV + 1, :]
    b_v = P[_BV:_BV + 1, :]
    THC = P[_THC:_THC + 1, :]
    FI1 = P[_FI1:_FI1 + 1, :]
    f_I = P[_FI:_FI + 1, :]
    GD  = P[_GD:_GD + 1, :]

    carry0 = (statef_ref[0:1, :], statef_ref[1:2, :], statef_ref[2:3, :],
              statef_ref[3:4, :], statef_ref[4:5, :])

    def group_body(gi, carry):
        v, g, theta_s, theta_v, I_add = carry
        base = pl.multiple_of(gi * GROUP, GROUP)
        rows = []
        # 8 GLIF steps statically unrolled; padded lanes stay isolated because
        # the padded W rows are zero (sp=1 / g=1 there is benign, sliced off).
        for j in range(GROUP):
            I_ext = iext_ref[pl.ds(base + j, 1), :]            # (1, N_PAD)
            pre = (I_add + g) * 0.5
            # synaptic matvec on the MXU; W read at the point of use.
            I_syn = jnp.dot(pre, w_ref[...],
                            preferred_element_type=jnp.float32)
            v_next = A + VM * v + C * (I_syn + I_ext)
            thr = theta_s + theta_v
            sp_soft = jax.nn.sigmoid(v_next - thr)             # surrogate spike
            sp = (v_next >= thr).astype(jnp.float32)           # hard spike
            nsp = 1.0 - sp
            v = sp * (Dc + f_v * v) + nsp * v_next             # uses old v on RHS
            theta_s = BS1 * theta_s + sp * dts
            theta_v = theta_v + nsp * (a_v * v - b_v * theta_v + THC)
            I_add = FI1 * I_add + sp * f_I
            g = sp + nsp * g * GD
            rows.append(sp_soft)
        # One full (8,128) unmasked store per group instead of 8 masked ones.
        spiked_ref[pl.ds(base, GROUP), :] = jnp.concatenate(rows, axis=0)
        return (v, g, theta_s, theta_v, I_add)

    v, g, theta_s, theta_v, I_add = lax.fori_loop(
        0, n_groups, group_body, carry0)

    # Write back only the 5 live state rows (rows 5..7 stay zero from init).
    statef_ref[0:1, :] = v
    statef_ref[1:2, :] = g
    statef_ref[2:3, :] = theta_s
    statef_ref[3:4, :] = theta_v
    statef_ref[4:5, :] = I_add


@functools.partial(jax.jit, static_argnames=("t_tile",))
def glif_forward(w, mask, state0, params, I_ext_seq, *, t_tile=128):
    """Fused T-step GLIF rollout.

    Args:
      w:          (N, N) recurrent weights (row_vec @ W convention).
      mask:       (N, N) static mask = self_recurrence_mask * neuron_types.
      state0:     (5, N) rows: v, g, theta_s, theta_v, I_additive.
      params:     (13, N) rows: G, E_L, f_v, f_I, delta_theta_s, b_s, a_v, b_v,
                  theta_inf, delta_V, tau_m, tau_g, norm_R.
      I_ext_seq:  (T, N) external input current per timestep.
    Returns:
      (spiked_soft_seq (T, N), new_state (5, N))
    """
    T, n = I_ext_seq.shape
    assert T % t_tile == 0, "T must be a multiple of t_tile"
    assert t_tile % GROUP == 0, "t_tile must be a multiple of the unroll group"

    # ---- hoist all static per-step work out of the hot loop ----
    W_eff = (w * mask).astype(jnp.float32)
    derived = jnp.stack(_fold_params(params.astype(jnp.float32)), axis=0)  # (13,N)

    # ---- pad to lane-dense / sublane-aligned tiles; padded W rows are zero
    #      so padded lanes never leak into real lanes through the matvec ----
    W_p = jnp.zeros((N_PAD, N_PAD), jnp.float32).at[:n, :n].set(W_eff)
    P_p = jnp.zeros((P_ROWS, N_PAD), jnp.float32).at[:13, :n].set(derived)
    S_p = jnp.zeros((S_ROWS, N_PAD), jnp.float32).at[:5, :n].set(
        state0.astype(jnp.float32))
    I_p = jnp.zeros((T, N_PAD), jnp.float32).at[:, :n].set(
        I_ext_seq.astype(jnp.float32))

    full_block = lambda i: (0, 0)
    spiked_p, statef_p = pl.pallas_call(
        glif_seq_kernel,
        out_shape=(jax.ShapeDtypeStruct((T, N_PAD), jnp.float32),
                   jax.ShapeDtypeStruct((S_ROWS, N_PAD), jnp.float32)),
        grid_spec=pltpu.PrefetchScalarGridSpec(
            num_scalar_prefetch=0,
            grid=(T // t_tile,),
            in_specs=[
                pl.BlockSpec((N_PAD, N_PAD), full_block),        # W_eff
                pl.BlockSpec((P_ROWS, N_PAD), full_block),       # folded params
                pl.BlockSpec((S_ROWS, N_PAD), full_block),       # state0
                pl.BlockSpec((t_tile, N_PAD), lambda i: (i, 0)), # I_ext stream
            ],
            out_specs=[
                pl.BlockSpec((t_tile, N_PAD), lambda i: (i, 0)), # spikes stream
                pl.BlockSpec((S_ROWS, N_PAD), full_block),       # resident state
            ],
        ),
        compiler_params=pltpu.CompilerParams(
            dimension_semantics=("arbitrary",)),   # time axis is recurrent
    )(W_p, P_p, S_p, I_p)

    return spiked_p[:, :n], statef_p[:5, :n]


@jax.jit
def glif_forward_ref(w, mask, state0, params, I_ext_seq):
    """Pure-JAX reference: same math as the PyTorch forward, written with the
    identical folded-constant formulation used by the kernel."""
    W_eff = (w * mask).astype(jnp.float32)
    A, VM, C, f_v, Dc, dts, BS1, a_v, b_v, THC, FI1, f_I, GD = _fold_params(
        params.astype(jnp.float32))

    def step(carry, I_ext):
        v, g, theta_s, theta_v, I_add = carry
        pre = (I_add + g) * 0.5
        I_syn = jnp.dot(pre, W_eff, precision=lax.Precision.HIGHEST)
        v_next = A + VM * v + C * (I_syn + I_ext)
        thr = theta_s + theta_v
        sp_soft = jax.nn.sigmoid(v_next - thr)
        sp = (v_next >= thr).astype(jnp.float32)
        nsp = 1.0 - sp
        v_new = sp * (Dc + f_v * v) + nsp * v_next
        theta_s_new = BS1 * theta_s + sp * dts
        theta_v_new = theta_v + nsp * (a_v * v_new - b_v * theta_v + THC)
        I_add_new = FI1 * I_add + sp * f_I
        g_new = sp + nsp * g * GD
        return (v_new, g_new, theta_s_new, theta_v_new, I_add_new), sp_soft

    carry0 = (state0[0], state0[1], state0[2], state0[3], state0[4])
    (v, g, ts, tv, Ia), spikes = lax.scan(step, carry0, I_ext_seq)
    new_state = jnp.stack([v, g, ts, tv, Ia], axis=0)
    return spikes, new_state


if __name__ == "__main__":
    key = jax.random.PRNGKey(0)
    k_w, k_i = jax.random.split(key)

    T = 256
    T_TILE = 128

    # --- deterministic parameter setup (scalars broadcast to N, as in __init__) ---
    sp = dict(tau_m=2.75, tau_g=3.5, G=0.7, E_L=-65.0, delta_theta_s=25.0,
              b_s=0.3, f_v=0.14, delta_V=12.0, f_I=0.4, b_v=0.5, a_v=0.5,
              theta_inf=-20.0)
    ones = jnp.ones((N,), jnp.float32)
    G_v    = jnp.clip(ones * sp['G'], 0.01, 0.99)
    E_L_v  = jnp.clip(ones * sp['E_L'], -80.0, -35.0)
    f_v_v  = jnp.clip(ones * sp['f_v'], 0.01, 0.99)
    f_I_v  = jnp.clip(ones * sp['f_I'], 0.01, 0.99)
    dts_v  = jnp.clip(ones * sp['delta_theta_s'], 6.0, 30.0)
    b_s_v  = jnp.clip(ones * sp['b_s'], 0.01, 0.99)
    a_v_v  = jnp.clip(ones * sp['a_v'], 0.01, 0.99)
    b_v_v  = jnp.clip(ones * sp['b_v'], 0.01, 0.99)
    tinf_v = jnp.clip(ones * sp['theta_inf'], -25.0, 0.0)
    dV_v   = jnp.clip(ones * sp['delta_V'], 1.0, 35.0)
    taum_v = jnp.clip(ones * sp['tau_m'], 1.5, 8.0)
    taug_v = jnp.clip(ones * sp['tau_g'], 1.0, 12.0)
    # Theta_max / norm_R_const (computed from unclamped values in the module)
    normR_v = (ones * sp['delta_theta_s'] / sp['b_s']
               - sp['a_v'] / sp['b_v'] * sp['E_L'] + sp['delta_V'])

    params = jnp.stack([G_v, E_L_v, f_v_v, f_I_v, dts_v, b_s_v, a_v_v, b_v_v,
                        tinf_v, dV_v, taum_v, taug_v, normR_v], axis=0)  # (13, N)

    # recurrent weights: w_mean - w_var + 2*w_var*U(0,1), w_mean=0.2, w_var=0.15
    w = 0.2 - 0.15 + 2 * 0.15 * jax.random.uniform(k_w, (N, N), jnp.float32)

    # neuron types (half excitatory / half inhibitory) x self-recurrence mask.
    nt = jnp.array([1.0] * (N // 2) + [-1.0] * (N // 2), jnp.float32)
    neuron_types_mat = nt[:, None] * jnp.ones((N, N), jnp.float32)   # row i = nt[i]
    self_rec_mask = jnp.ones((N, N), jnp.float32) - jnp.eye(N, dtype=jnp.float32)
    mask = neuron_types_mat * self_rec_mask

    # initial hidden state (rows: v, g, theta_s, theta_v, I_additive)
    state0 = jnp.stack([
        E_L_v,                          # v = E_L
        jnp.zeros((N,), jnp.float32),   # g
        dts_v,                          # theta_s = delta_theta_s
        dV_v,                           # theta_v = delta_V
        jnp.zeros((N,), jnp.float32),   # I_additive
    ], axis=0)                          # (5, N)

    # external input current sequence (T, N)
    I_ext_seq = jax.random.uniform(k_i, (T, N), jnp.float32)

    spiked, new_state = glif_forward(w, mask, state0, params, I_ext_seq,
                                     t_tile=T_TILE)
    jax.block_until_ready((spiked, new_state))

    spiked_r, new_state_r = glif_forward_ref(w, mask, state0, params, I_ext_seq)
    jax.block_until_ready((spiked_r, new_state_r))

    assert spiked.shape == (T, N) and new_state.shape == (5, N)
    assert jnp.allclose(spiked, spiked_r, atol=2e-3, rtol=2e-3), "spike mismatch"
    assert jnp.allclose(new_state, new_state_r, atol=2e-3, rtol=2e-3), \
        "state mismatch"

    print("KERNEL_OK")
</pallas_src>

<mosaic_0001>
module attributes {stable_mosaic.version = 11 : i64} {
  func.func @glif_seq_kernel(%arg0: i32, %arg1: memref<128x128xf32, #tpu.memory_space<vmem>>, %arg2: memref<16x128xf32, #tpu.memory_space<vmem>>, %arg3: memref<8x128xf32, #tpu.memory_space<vmem>>, %arg4: memref<128x128xf32, #tpu.memory_space<vmem>>, %arg5: memref<128x128xf32, #tpu.memory_space<vmem>>, %arg6: memref<8x128xf32, #tpu.memory_space<vmem>>) attributes {dimension_semantics = [#tpu.dimension_semantics<arbitrary>], iteration_bounds = array<i64: 2>, scalar_prefetch = 0 : i64, scratch_operands = 0 : i64, tpu.core_type = #tpu.core_type<tc>, window_params = [{pipeline_mode = #tpu.pipeline_mode<synchronous>, transform_indices = @transform_0, window_bounds = array<i64: 128, 128>}, {pipeline_mode = #tpu.pipeline_mode<synchronous>, transform_indices = @transform_1, window_bounds = array<i64: 16, 128>}, {pipeline_mode = #tpu.pipeline_mode<synchronous>, transform_indices = @transform_2, window_bounds = array<i64: 8, 128>}, {transform_indices = @transform_3, window_bounds = array<i64: 128, 128>}, {transform_indices = @transform_4, window_bounds = array<i64: 128, 128>}, {pipeline_mode = #tpu.pipeline_mode<synchronous>, transform_indices = @transform_5, window_bounds = array<i64: 8, 128>}]} {
    %c0_i32 = arith.constant 0 : i32
    %0 = arith.cmpi eq, %arg0, %c0_i32 : i32
    %1 = arith.extui %0 : i1 to i32
    %c0_i32_0 = arith.constant 0 : i32
    %2 = arith.cmpi ne, %1, %c0_i32_0 : i32
    scf.if %2 {
      %c0_20 = arith.constant 0 : index
      %c0_21 = arith.constant 0 : index
      %29 = vector.load %arg3[%c0_20, %c0_21] : memref<8x128xf32, #tpu.memory_space<vmem>>, vector<8x128xf32>
      %c0_22 = arith.constant 0 : index
      %c0_23 = arith.constant 0 : index
      %30 = vector.load %arg6[%c0_22, %c0_23] : memref<8x128xf32, #tpu.memory_space<vmem>>, vector<8x128xf32>
      tpu.vector_store %arg6[%c0_22, %c0_23], %29 {strides = array<i32>} : memref<8x128xf32, #tpu.memory_space<vmem>>, vector<8x128xf32>,
    } else {
    }
    %c0 = arith.constant 0 : index
    %c0_1 = arith.constant 0 : index
    %3 = vector.load %arg2[%c0, %c0_1] : memref<16x128xf32, #tpu.memory_space<vmem>>, vector<16x128xf32>
    %4 = vector.extract_strided_slice %3 {offsets = [0, 0], sizes = [1, 128], strides = [1, 1]} : vector<16x128xf32> to vector<1x128xf32>
    %5 = vector.extract_strided_slice %3 {offsets = [1, 0], sizes = [1, 128], strides = [1, 1]} : vector<16x128xf32> to vector<1x128xf32>
    %6 = vector.extract_strided_slice %3 {offsets = [2, 0], sizes = [1, 128], strides = [1, 1]} : vector<16x128xf32> to vector<1x128xf32>
    %7 = vector.extract_strided_slice %3 {offsets = [3, 0], sizes = [1, 128], strides = [1, 1]} : vector<16x128xf32> to vector<1x128xf32>
    %8 = vector.extract_strided_slice %3 {offsets = [4, 0], sizes = [1, 128], strides = [1, 1]} : vector<16x128xf32> to vector<1x128xf32>
    %9 = vector.extract_strided_slice %3 {offsets = [5, 0], sizes = [1, 128], strides = [1, 1]} : vector<16x128xf32> to vector<1x128xf32>
    %10 = vector.extract_strided_slice %3 {offsets = [6, 0], sizes = [1, 128], strides = [1, 1]} : vector<16x128xf32> to vector<1x128xf32>
    %11 = vector.extract_strided_slice %3 {offsets = [7, 0], sizes = [1, 128], strides = [1, 1]} : vector<16x128xf32> to vector<1x128xf32>
    %12 = vector.extract_strided_slice %3 {offsets = [8, 0], sizes = [1, 128], strides = [1, 1]} : vector<16x128xf32> to vector<1x128xf32>
    %13 = vector.extract_strided_slice %3 {offsets = [9, 0], sizes = [1, 128], strides = [1, 1]} : vector<16x128xf32> to vector<1x128xf32>
    %14 = vector.extract_strided_slice %3 {offsets = [10, 0], sizes = [1, 128], strides = [1, 1]} : vector<16x128xf32> to vector<1x128xf32>
    %15 = vector.extract_strided_slice %3 {offsets = [11, 0], sizes = [1, 128], strides = [1, 1]} : vector<16x128xf32> to vector<1x128xf32>
    %16 = vector.extract_strided_slice %3 {offsets = [12, 0], sizes = [1, 128], strides = [1, 1]} : vector<16x128xf32> to vector<1x128xf32>
    %c0_2 = arith.constant 0 : index
    %c0_3 = arith.constant 0 : index
    %17 = vector.load %arg6[%c0_2, %c0_3] : memref<8x128xf32, #tpu.memory_space<vmem>>, vector<1x128xf32>
    %c1 = arith.constant 1 : index
    %c0_4 = arith.constant 0 : index
    %18 = vector.load %arg6[%c1, %c0_4] : memref<8x128xf32, #tpu.memory_space<vmem>>, vector<1x128xf32>
    %c2 = arith.constant 2 : index
    %c0_5 = arith.constant 0 : index
    %19 = vector.load %arg6[%c2, %c0_5] : memref<8x128xf32, #tpu.memory_space<vmem>>, vector<1x128xf32>
    %c3 = arith.constant 3 : index
    %c0_6 = arith.constant 0 : index
    %20 = vector.load %arg6[%c3, %c0_6] : memref<8x128xf32, #tpu.memory_space<vmem>>, vector<1x128xf32>
    %c4 = arith.constant 4 : index
    %c0_7 = arith.constant 0 : index
    %21 = vector.load %arg6[%c4, %c0_7] : memref<8x128xf32, #tpu.memory_space<vmem>>, vector<1x128xf32>
    %c0_i32_8 = arith.constant 0 : i32
    %c16_i32 = arith.constant 16 : i32
    %22 = arith.addi %c0_i32_8, %c16_i32 : i32
    %c1_i32 = arith.constant 1 : i32
    %23:5 = scf.for %arg7 = %c0_i32_8 to %22 step %c1_i32 iter_args(%arg8 = %17, %arg9 = %18, %arg10 = %19, %arg11 = %20, %arg12 = %21) -> (vector<1x128xf32>, vector<1x128xf32>, vector<1x128xf32>, vector<1x128xf32>, vector<1x128xf32>)  : i32 {
      %c8_i32 = arith.constant 8 : i32
      %29 = arith.muli %arg7, %c8_i32 : i32
      %30 = tpu.assume_multiple %29, 8 : i32
      %c0_i32_20 = arith.constant 0 : i32
      %31 = arith.addi %30, %c0_i32_20 : i32
      %32 = arith.index_cast %31 : i32 to index
      %c0_21 = arith.constant 0 : index
      %33 = vector.load %arg4[%32, %c0_21] : memref<128x128xf32, #tpu.memory_space<vmem>>, vector<1x128xf32>
      %34 = arith.addf %arg12, %arg9 : vector<1x128xf32>
      %cst = arith.constant 5.000000e-01 : f32
      %35 = vector.broadcast %cst : f32 to vector<1x128xf32>
      %36 = arith.mulf %34, %35 : vector<1x128xf32>
      %c0_22 = arith.constant 0 : index
      %c0_23 = arith.constant 0 : index
      %37 = vector.load %arg1[%c0_22, %c0_23] : memref<128x128xf32, #tpu.memory_space<vmem>>, vector<128x128xf32>
      %cst_24 = arith.constant dense<0.000000e+00> : vector<1x128xf32>
      %38 = tpu.matmul %36, %37, %cst_24 {dimension_numbers = #tpu.dot_dimension_numbers<[1], [0], [0], [1], [0, 0, 1, 1], [], []>} : vector<1x128xf32>, vector<128x128xf32>, vector<1x128xf32> -> vector<1x128xf32>
      %39 = arith.mulf %5, %arg8 : vector<1x128xf32>
      %40 = arith.addf %4, %39 : vector<1x128xf32>
      %41 = arith.addf %38, %33 : vector<1x128xf32>
      %42 = arith.mulf %6, %41 : vector<1x128xf32>
      %43 = arith.addf %40, %42 : vector<1x128xf32>
      %44 = arith.addf %arg10, %arg11 : vector<1x128xf32>
      %45 = arith.subf %43, %44 : vector<1x128xf32>
      %46 = arith.negf %45 : vector<1x128xf32>
      %47 = math.exp %46 : vector<1x128xf32>
      %cst_25 = arith.constant 1.000000e+00 : f32
      %48 = vector.broadcast %cst_25 : f32 to vector<1x128xf32>
      %49 = arith.addf %48, %47 : vector<1x128xf32>
      %50 = arith.divf %48, %49 : vector<1x128xf32>
      %51 = arith.cmpf oge, %43, %44 : vector<1x128xf32>
      %52 = arith.extui %51 : vector<1x128xi1> to vector<1x128xi32>
      %53 = arith.sitofp %52 : vector<1x128xi32> to vector<1x128xf32>
      %cst_26 = arith.constant 1.000000e+00 : f32
      %54 = vector.broadcast %cst_26 : f32 to vector<1x128xf32>
      %55 = arith.subf %54, %53 : vector<1x128xf32>
      %56 = arith.mulf %7, %arg8 : vector<1x128xf32>
      %57 = arith.addf %8, %56 : vector<1x128xf32>
      %58 = arith.mulf %53, %57 : vector<1x128xf32>
      %59 = arith.mulf %55, %43 : vector<1x128xf32>
      %60 = arith.addf %58, %59 : vector<1x128xf32>
      %61 = arith.mulf %10, %arg10 : vector<1x128xf32>
      %62 = arith.mulf %53, %9 : vector<1x128xf32>
      %63 = arith.addf %61, %62 : vector<1x128xf32>
      %64 = arith.mulf %11, %60 : vector<1x128xf32>
      %65 = arith.mulf %12, %arg11 : vector<1x128xf32>
      %66 = arith.subf %64, %65 : vector<1x128xf32>
      %67 = arith.addf %66, %13 : vector<1x128xf32>
      %68 = arith.mulf %55, %67 : vector<1x128xf32>
      %69 = arith.addf %arg11, %68 : vector<1x128xf32>
      %70 = arith.mulf %14, %arg12 : vector<1x128xf32>
      %71 = arith.mulf %53, %15 : vector<1x128xf32>
      %72 = arith.addf %70, %71 : vector<1x128xf32>
      %73 = arith.mulf %55, %arg9 : vector<1x128xf32>
      %74 = arith.mulf %73, %16 : vector<1x128xf32>
      %75 = arith.addf %53, %74 : vector<1x128xf32>
      %c1_i32_27 = arith.constant 1 : i32
      %76 = arith.addi %30, %c1_i32_27 : i32
      %77 = arith.index_cast %76 : i32 to index
      %c0_28 = arith.constant 0 : index
      %78 = vector.load %arg4[%77, %c0_28] : memref<128x128xf32, #tpu.memory_space<vmem>>, vector<1x128xf32>
      %79 = arith.addf %72, %75 : vector<1x128xf32>
      %cst_29 = arith.constant 5.000000e-01 : f32
      %80 = vector.broadcast %cst_29 : f32 to vector<1x128xf32>
      %81 = arith.mulf %79, %80 : vector<1x128xf32>
      %c0_30 = arith.constant 0 : index
      %c0_31 = arith.constant 0 : index
      %82 = vector.load %arg1[%c0_30, %c0_31] : memref<128x128xf32, #tpu.memory_space<vmem>>, vector<128x128xf32>
      %cst_32 = arith.constant dense<0.000000e+00> : vector<1x128xf32>
      %83 = tpu.matmul %81, %82, %cst_32 {dimension_numbers = #tpu.dot_dimension_numbers<[1], [0], [0], [1], [0, 0, 1, 1], [], []>} : vector<1x128xf32>, vector<128x128xf32>, vector<1x128xf32> -> vector<1x128xf32>
      %84 = arith.mulf %5, %60 : vector<1x128xf32>
      %85 = arith.addf %4, %84 : vector<1x128xf32>
      %86 = arith.addf %83, %78 : vector<1x128xf32>
      %87 = arith.mulf %6, %86 : vector<1x128xf32>
      %88 = arith.addf %85, %87 : vector<1x128xf32>
      %89 = arith.addf %63, %69 : vector<1x128xf32>
      %90 = arith.subf %88, %89 : vector<1x128xf32>
      %91 = arith.negf %90 : vector<1x128xf32>
      %92 = math.exp %91 : vector<1x128xf32>
      %cst_33 = arith.constant 1.000000e+00 : f32
      %93 = vector.broadcast %cst_33 : f32 to vector<1x128xf32>
      %94 = arith.addf %93, %92 : vector<1x128xf32>
      %95 = arith.divf %93, %94 : vector<1x128xf32>
      %96 = arith.cmpf oge, %88, %89 : vector<1x128xf32>
      %97 = arith.extui %96 : vector<1x128xi1> to vector<1x128xi32>
      %98 = arith.sitofp %97 : vector<1x128xi32> to vector<1x128xf32>
      %cst_34 = arith.constant 1.000000e+00 : f32
      %99 = vector.broadcast %cst_34 : f32 to vector<1x128xf32>
      %100 = arith.subf %99, %98 : vector<1x128xf32>
      %101 = arith.mulf %7, %60 : vector<1x128xf32>
      %102 = arith.addf %8, %101 : vector<1x128xf32>
      %103 = arith.mulf %98, %102 : vector<1x128xf32>
      %104 = arith.mulf %100, %88 : vector<1x128xf32>
      %105 = arith.addf %103, %104 : vector<1x128xf32>
      %106 = arith.mulf %10, %63 : vector<1x128xf32>
      %107 = arith.mulf %98, %9 : vector<1x128xf32>
      %108 = arith.addf %106, %107 : vector<1x128xf32>
      %109 = arith.mulf %11, %105 : vector<1x128xf32>
      %110 = arith.mulf %12, %69 : vector<1x128xf32>
      %111 = arith.subf %109, %110 : vector<1x128xf32>
      %112 = arith.addf %111, %13 : vector<1x128xf32>
      %113 = arith.mulf %100, %112 : vector<1x128xf32>
      %114 = arith.addf %69, %113 : vector<1x128xf32>
      %115 = arith.mulf %14, %72 : vector<1x128xf32>
      %116 = arith.mulf %98, %15 : vector<1x128xf32>
      %117 = arith.addf %115, %116 : vector<1x128xf32>
      %118 = arith.mulf %100, %75 : vector<1x128xf32>
      %119 = arith.mulf %118, %16 : vector<1x128xf32>
      %120 = arith.addf %98, %119 : vector<1x128xf32>
      %c2_i32 = arith.constant 2 : i32
      %121 = arith.addi %30, %c2_i32 : i32
      %122 = arith.index_cast %121 : i32 to index
      %c0_35 = arith.constant 0 : index
      %123 = vector.load %arg4[%122, %c0_35] : memref<128x128xf32, #tpu.memory_space<vmem>>, vector<1x128xf32>
      %124 = arith.addf %117, %120 : vector<1x128xf32>
      %cst_36 = arith.constant 5.000000e-01 : f32
      %125 = vector.broadcast %cst_36 : f32 to vector<1x128xf32>
      %126 = arith.mulf %124, %125 : vector<1x128xf32>
      %c0_37 = arith.constant 0 : index
      %c0_38 = arith.constant 0 : index
      %127 = vector.load %arg1[%c0_37, %c0_38] : memref<128x128xf32, #tpu.memory_space<vmem>>, vector<128x128xf32>
      %cst_39 = arith.constant dense<0.000000e+00> : vector<1x128xf32>
      %128 = tpu.matmul %126, %127, %cst_39 {dimension_numbers = #tpu.dot_dimension_numbers<[1], [0], [0], [1], [0, 0, 1, 1], [], []>} : vector<1x128xf32>, vector<128x128xf32>, vector<1x128xf32> -> vector<1x128xf32>
      %129 = arith.mulf %5, %105 : vector<1x128xf32>
      %130 = arith.addf %4, %129 : vector<1x128xf32>
      %131 = arith.addf %128, %123 : vector<1x128xf32>
      %132 = arith.mulf %6, %131 : vector<1x128xf32>
      %133 = arith.addf %130, %132 : vector<1x128xf32>
      %134 = arith.addf %108, %114 : vector<1x128xf32>
      %135 = arith.subf %133, %134 : vector<1x128xf32>
      %136 = arith.negf %135 : vector<1x128xf32>
      %137 = math.exp %136 : vector<1x128xf32>
      %cst_40 = arith.constant 1.000000e+00 : f32
      %138 = vector.broadcast %cst_40 : f32 to vector<1x128xf32>
      %139 = arith.addf %138, %137 : vector<1x128xf32>
      %140 = arith.divf %138, %139 : vector<1x128xf32>
      %141 = arith.cmpf oge, %133, %134 : vector<1x128xf32>
      %142 = arith.extui %141 : vector<1x128xi1> to vector<1x128xi32>
      %143 = arith.sitofp %142 : vector<1x128xi32> to vector<1x128xf32>
      %cst_41 = arith.constant 1.000000e+00 : f32
      %144 = vector.broadcast %cst_41 : f32 to vector<1x128xf32>
      %145 = arith.subf %144, %143 : vector<1x128xf32>
      %146 = arith.mulf %7, %105 : vector<1x128xf32>
      %147 = arith.addf %8, %146 : vector<1x128xf32>
      %148 = arith.mulf %143, %147 : vector<1x128xf32>
      %149 = arith.mulf %145, %133 : vector<1x128xf32>
      %150 = arith.addf %148, %149 : vector<1x128xf32>
      %151 = arith.mulf %10, %108 : vector<1x128xf32>
      %152 = arith.mulf %143, %9 : vector<1x128xf32>
      %153 = arith.addf %151, %152 : vector<1x128xf32>
      %154 = arith.mulf %11, %150 : vector<1x128xf32>
      %155 = arith.mulf %12, %114 : vector<1x128xf32>
      %156 = arith.subf %154, %155 : vector<1x128xf32>
      %157 = arith.addf %156, %13 : vector<1x128xf32>
      %158 = arith.mulf %145, %157 : vector<1x128xf32>
      %159 = arith.addf %114, %158 : vector<1x128xf32>
      %160 = arith.mulf %14, %117 : vector<1x128xf32>
      %161 = arith.mulf %143, %15 : vector<1x128xf32>
      %162 = arith.addf %160, %161 : vector<1x128xf32>
      %163 = arith.mulf %145, %120 : vector<1x128xf32>
      %164 = arith.mulf %163, %16 : vector<1x128xf32>
      %165 = arith.addf %143, %164 : vector<1x128xf32>
      %c3_i32 = arith.constant 3 : i32
      %166 = arith.addi %30, %c3_i32 : i32
      %167 = arith.index_cast %166 : i32 to index
      %c0_42 = arith.constant 0 : index
      %168 = vector.load %arg4[%167, %c0_42] : memref<128x128xf32, #tpu.memory_space<vmem>>, vector<1x128xf32>
      %169 = arith.addf %162, %165 : vector<1x128xf32>
      %cst_43 = arith.constant 5.000000e-01 : f32
      %170 = vector.broadcast %cst_43 : f32 to vector<1x128xf32>
      %171 = arith.mulf %169, %170 : vector<1x128xf32>
      %c0_44 = arith.constant 0 : index
      %c0_45 = arith.constant 0 : index
      %172 = vector.load %arg1[%c0_44, %c0_45] : memref<128x128xf32, #tpu.memory_space<vmem>>, vector<128x128xf32>
      %cst_46 = arith.constant dense<0.000000e+00> : vector<1x128xf32>
      %173 = tpu.matmul %171, %172, %cst_46 {dimension_numbers = #tpu.dot_dimension_numbers<[1], [0], [0], [1], [0, 0, 1, 1], [], []>} : vector<1x128xf32>, vector<128x128xf32>, vector<1x128xf32> -> vector<1x128xf32>
      %174 = arith.mulf %5, %150 : vector<1x128xf32>
      %175 = arith.addf %4, %174 : vector<1x128xf32>
      %176 = arith.addf %173, %168 : vector<1x128xf32>
      %177 = arith.mulf %6, %176 : vector<1x128xf32>
      %178 = arith.addf %175, %177 : vector<1x128xf32>
      %179 = arith.addf %153, %159 : vector<1x128xf32>
      %180 = arith.subf %178, %179 : vector<1x128xf32>
      %181 = arith.negf %180 : vector<1x128xf32>
      %182 = math.exp %181 : vector<1x128xf32>
      %cst_47 = arith.constant 1.000000e+00 : f32
      %183 = vector.broadcast %cst_47 : f32 to vector<1x128xf32>
      %184 = arith.addf %183, %182 : vector<1x128xf32>
      %185 = arith.divf %183, %184 : vector<1x128xf32>
      %186 = arith.cmpf oge, %178, %179 : vector<1x128xf32>
      %187 = arith.extui %186 : vector<1x128xi1> to vector<1x128xi32>
      %188 = arith.sitofp %187 : vector<1x128xi32> to vector<1x128xf32>
      %cst_48 = arith.constant 1.000000e+00 : f32
      %189 = vector.broadcast %cst_48 : f32 to vector<1x128xf32>
      %190 = arith.subf %189, %188 : vector<1x128xf32>
      %191 = arith.mulf %7, %150 : vector<1x128xf32>
      %192 = arith.addf %8, %191 : vector<1x128xf32>
      %193 = arith.mulf %188, %192 : vector<1x128xf32>
      %194 = arith.mulf %190, %178 : vector<1x128xf32>
      %195 = arith.addf %193, %194 : vector<1x128xf32>
      %196 = arith.mulf %10, %153 : vector<1x128xf32>
      %197 = arith.mulf %188, %9 : vector<1x128xf32>
      %198 = arith.addf %196, %197 : vector<1x128xf32>
      %199 = arith.mulf %11, %195 : vector<1x128xf32>
      %200 = arith.mulf %12, %159 : vector<1x128xf32>
      %201 = arith.subf %199, %200 : vector<1x128xf32>
      %202 = arith.addf %201, %13 : vector<1x128xf32>
      %203 = arith.mulf %190, %202 : vector<1x128xf32>
      %204 = arith.addf %159, %203 : vector<1x128xf32>
      %205 = arith.mulf %14, %162 : vector<1x128xf32>
      %206 = arith.mulf %188, %15 : vector<1x128xf32>
      %207 = arith.addf %205, %206 : vector<1x128xf32>
      %208 = arith.mulf %190, %165 : vector<1x128xf32>
      %209 = arith.mulf %208, %16 : vector<1x128xf32>
      %210 = arith.addf %188, %209 : vector<1x128xf32>
      %c4_i32 = arith.constant 4 : i32
      %211 = arith.addi %30, %c4_i32 : i32
      %212 = arith.index_cast %211 : i32 to index
      %c0_49 = arith.constant 0 : index
      %213 = vector.load %arg4[%212, %c0_49] : memref<128x128xf32, #tpu.memory_space<vmem>>, vector<1x128xf32>
      %214 = arith.addf %207, %210 : vector<1x128xf32>
      %cst_50 = arith.constant 5.000000e-01 : f32
      %215 = vector.broadcast %cst_50 : f32 to vector<1x128xf32>
      %216 = arith.mulf %214, %215 : vector<1x128xf32>
      %c0_51 = arith.constant 0 : index
      %c0_52 = arith.constant 0 : index
      %217 = vector.load %arg1[%c0_51, %c0_52] : memref<128x128xf32, #tpu.memory_space<vmem>>, vector<128x128xf32>
      %cst_53 = arith.constant dense<0.000000e+00> : vector<1x128xf32>
      %218 = tpu.matmul %216, %217, %cst_53 {dimension_numbers = #tpu.dot_dimension_numbers<[1], [0], [0], [1], [0, 0, 1, 1], [], []>} : vector<1x128xf32>, vector<128x128xf32>, vector<1x128xf32> -> vector<1x128xf32>
      %219 = arith.mulf %5, %195 : vector<1x128xf32>
      %220 = arith.addf %4, %219 : vector<1x128xf32>
      %221 = arith.addf %218, %213 : vector<1x128xf32>
      %222 = arith.mulf %6, %221 : vector<1x128xf32>
      %223 = arith.addf %220, %222 : vector<1x128xf32>
      %224 = arith.addf %198, %204 : vector<1x128xf32>
      %225 = arith.subf %223, %224 : vector<1x128xf32>
      %226 = arith.negf %225 : vector<1x128xf32>
      %227 = math.exp %226 : vector<1x128xf32>
      %cst_54 = arith.constant 1.000000e+00 : f32
      %228 = vector.broadcast %cst_54 : f32 to vector<1x128xf32>
      %229 = arith.addf %228, %227 : vector<1x128xf32>
      %230 = arith.divf %228, %229 : vector<1x128xf32>
      %231 = arith.cmpf oge, %223, %224 : vector<1x128xf32>
      %232 = arith.extui %231 : vector<1x128xi1> to vector<1x128xi32>
      %233 = arith.sitofp %232 : vector<1x128xi32> to vector<1x128xf32>
      %cst_55 = arith.constant 1.000000e+00 : f32
      %234 = vector.broadcast %cst_55 : f32 to vector<1x128xf32>
      %235 = arith.subf %234, %233 : vector<1x128xf32>
      %236 = arith.mulf %7, %195 : vector<1x128xf32>
      %237 = arith.addf %8, %236 : vector<1x128xf32>
      %238 = arith.mulf %233, %237 : vector<1x128xf32>
      %239 = arith.mulf %235, %223 : vector<1x128xf32>
      %240 = arith.addf %238, %239 : vector<1x128xf32>
      %241 = arith.mulf %10, %198 : vector<1x128xf32>
      %242 = arith.mulf %233, %9 : vector<1x128xf32>
      %243 = arith.addf %241, %242 : vector<1x128xf32>
      %244 = arith.mulf %11, %240 : vector<1x128xf32>
      %245 = arith.mulf %12, %204 : vector<1x128xf32>
      %246 = arith.subf %244, %245 : vector<1x128xf32>
      %247 = arith.addf %246, %13 : vector<1x128xf32>
      %248 = arith.mulf %235, %247 : vector<1x128xf32>
      %249 = arith.addf %204, %248 : vector<1x128xf32>
      %250 = arith.mulf %14, %207 : vector<1x128xf32>
      %251 = arith.mulf %233, %15 : vector<1x128xf32>
      %252 = arith.addf %250, %251 : vector<1x128xf32>
      %253 = arith.mulf %235, %210 : vector<1x128xf32>
      %254 = arith.mulf %253, %16 : vector<1x128xf32>
      %255 = arith.addf %233, %254 : vector<1x128xf32>
      %c5_i32 = arith.constant 5 : i32
      %256 = arith.addi %30, %c5_i32 : i32
      %257 = arith.index_cast %256 : i32 to index
      %c0_56 = arith.constant 0 : index
      %258 = vector.load %arg4[%257, %c0_56] : memref<128x128xf32, #tpu.memory_space<vmem>>, vector<1x128xf32>
      %259 = arith.addf %252, %255 : vector<1x128xf32>
      %cst_57 = arith.constant 5.000000e-01 : f32
      %260 = vector.broadcast %cst_57 : f32 to vector<1x128xf32>
      %261 = arith.mulf %259, %260 : vector<1x128xf32>
      %c0_58 = arith.constant 0 : index
      %c0_59 = arith.constant 0 : index
      %262 = vector.load %arg1[%c0_58, %c0_59] : memref<128x128xf32, #tpu.memory_space<vmem>>, vector<128x128xf32>
      %cst_60 = arith.constant dense<0.000000e+00> : vector<1x128xf32>
      %263 = tpu.matmul %261, %262, %cst_60 {dimension_numbers = #tpu.dot_dimension_numbers<[1], [0], [0], [1], [0, 0, 1, 1], [], []>} : vector<1x128xf32>, vector<128x128xf32>, vector<1x128xf32> -> vector<1x128xf32>
      %264 = arith.mulf %5, %240 : vector<1x128xf32>
      %265 = arith.addf %4, %264 : vector<1x128xf32>
      %266 = arith.addf %263, %258 : vector<1x128xf32>
      %267 = arith.mulf %6, %266 : vector<1x128xf32>
      %268 = arith.addf %265, %267 : vector<1x128xf32>
      %269 = arith.addf %243, %249 : vector<1x128xf32>
      %270 = arith.subf %268, %269 : vector<1x128xf32>
      %271 = arith.negf %270 : vector<1x128xf32>
      %272 = math.exp %271 : vector<1x128xf32>
      %cst_61 = arith.constant 1.000000e+00 : f32
      %273 = vector.broadcast %cst_61 : f32 to vector<1x128xf32>
      %274 = arith.addf %273, %272 : vector<1x128xf32>
      %275 = arith.divf %273, %274 : vector<1x128xf32>
      %276 = arith.cmpf oge, %268, %269 : vector<1x128xf32>
      %277 = arith.extui %276 : vector<1x128xi1> to vector<1x128xi32>
      %278 = arith.sitofp %277 : vector<1x128xi32> to vector<1x128xf32>
      %cst_62 = arith.constant 1.000000e+00 : f32
      %279 = vector.broadcast %cst_62 : f32 to vector<1x128xf32>
      %280 = arith.subf %279, %278 : vector<1x128xf32>
      %281 = arith.mulf %7, %240 : vector<1x128xf32>
      %282 = arith.addf %8, %281 : vector<1x128xf32>
      %283 = arith.mulf %278, %282 : vector<1x128xf32>
      %284 = arith.mulf %280, %268 : vector<1x128xf32>
      %285 = arith.addf %283, %284 : vector<1x128xf32>
      %286 = arith.mulf %10, %243 : vector<1x128xf32>
      %287 = arith.mulf %278, %9 : vector<1x128xf32>
      %288 = arith.addf %286, %287 : vector<1x128xf32>
      %289 = arith.mulf %11, %285 : vector<1x128xf32>
      %290 = arith.mulf %12, %249 : vector<1x128xf32>
      %291 = arith.subf %289, %290 : vector<1x128xf32>
      %292 = arith.addf %291, %13 : vector<1x128xf32>
      %293 = arith.mulf %280, %292 : vector<1x128xf32>
      %294 = arith.addf %249, %293 : vector<1x128xf32>
      %295 = arith.mulf %14, %252 : vector<1x128xf32>
      %296 = arith.mulf %278, %15 : vector<1x128xf32>
      %297 = arith.addf %295, %296 : vector<1x128xf32>
      %298 = arith.mulf %280, %255 : vector<1x128xf32>
      %299 = arith.mulf %298, %16 : vector<1x128xf32>
      %300 = arith.addf %278, %299 : vector<1x128xf32>
      %c6_i32 = arith.constant 6 : i32
      %301 = arith.addi %30, %c6_i32 : i32
      %302 = arith.index_cast %301 : i32 to index
      %c0_63 = arith.constant 0 : index
      %303 = vector.load %arg4[%302, %c0_63] : memref<128x128xf32, #tpu.memory_space<vmem>>, vector<1x128xf32>
      %304 = arith.addf %297, %300 : vector<1x128xf32>
      %cst_64 = arith.constant 5.000000e-01 : f32
      %305 = vector.broadcast %cst_64 : f32 to vector<1x128xf32>
      %306 = arith.mulf %304, %305 : vector<1x128xf32>
      %c0_65 = arith.constant 0 : index
      %c0_66 = arith.constant 0 : index
      %307 = vector.load %arg1[%c0_65, %c0_66] : memref<128x128xf32, #tpu.memory_space<vmem>>, vector<128x128xf32>
      %cst_67 = arith.constant dense<0.000000e+00> : vector<1x128xf32>
      %308 = tpu.matmul %306, %307, %cst_67 {dimension_numbers = #tpu.dot_dimension_numbers<[1], [0], [0], [1], [0, 0, 1, 1], [], []>} : vector<1x128xf32>, vector<128x128xf32>, vector<1x128xf32> -> vector<1x128xf32>
      %309 = arith.mulf %5, %285 : vector<1x128xf32>
      %310 = arith.addf %4, %309 : vector<1x128xf32>
      %311 = arith.addf %308, %303 : vector<1x128xf32>
      %312 = arith.mulf %6, %311 : vector<1x128xf32>
      %313 = arith.addf %310, %312 : vector<1x128xf32>
      %314 = arith.addf %288, %294 : vector<1x128xf32>
      %315 = arith.subf %313, %314 : vector<1x128xf32>
      %316 = arith.negf %315 : vector<1x128xf32>
      %317 = math.exp %316 : vector<1x128xf32>
      %cst_68 = arith.constant 1.000000e+00 : f32
      %318 = vector.broadcast %cst_68 : f32 to vector<1x128xf32>
      %319 = arith.addf %318, %317 : vector<1x128xf32>
      %320 = arith.divf %318, %319 : vector<1x128xf32>
      %321 = arith.cmpf oge, %313, %314 : vector<1x128xf32>
      %322 = arith.extui %321 : vector<1x128xi1> to vector<1x128xi32>
      %323 = arith.sitofp %322 : vector<1x128xi32> to vector<1x128xf32>
      %cst_69 = arith.constant 1.000000e+00 : f32
      %324 = vector.broadcast %cst_69 : f32 to vector<1x128xf32>
      %325 = arith.subf %324, %323 : vector<1x128xf32>
      %326 = arith.mulf %7, %285 : vector<1x128xf32>
      %327 = arith.addf %8, %326 : vector<1x128xf32>
      %328 = arith.mulf %323, %327 : vector<1x128xf32>
      %329 = arith.mulf %325, %313 : vector<1x128xf32>
      %330 = arith.addf %328, %329 : vector<1x128xf32>
      %331 = arith.mulf %10, %288 : vector<1x128xf32>
      %332 = arith.mulf %323, %9 : vector<1x128xf32>
      %333 = arith.addf %331, %332 : vector<1x128xf32>
      %334 = arith.mulf %11, %330 : vector<1x128xf32>
      %335 = arith.mulf %12, %294 : vector<1x128xf32>
      %336 = arith.subf %334, %335 : vector<1x128xf32>
      %337 = arith.addf %336, %13 : vector<1x128xf32>
      %338 = arith.mulf %325, %337 : vector<1x128xf32>
      %339 = arith.addf %294, %338 : vector<1x128xf32>
      %340 = arith.mulf %14, %297 : vector<1x128xf32>
      %341 = arith.mulf %323, %15 : vector<1x128xf32>
      %342 = arith.addf %340, %341 : vector<1x128xf32>
      %343 = arith.mulf %325, %300 : vector<1x128xf32>
      %344 = arith.mulf %343, %16 : vector<1x128xf32>
      %345 = arith.addf %323, %344 : vector<1x128xf32>
      %c7_i32 = arith.constant 7 : i32
      %346 = arith.addi %30, %c7_i32 : i32
      %347 = arith.index_cast %346 : i32 to index
      %c0_70 = arith.constant 0 : index
      %348 = vector.load %arg4[%347, %c0_70] : memref<128x128xf32, #tpu.memory_space<vmem>>, vector<1x128xf32>
      %349 = arith.addf %342, %345 : vector<1x128xf32>
      %cst_71 = arith.constant 5.000000e-01 : f32
      %350 = vector.broadcast %cst_71 : f32 to vector<1x128xf32>
      %351 = arith.mulf %349, %350 : vector<1x128xf32>
      %c0_72 = arith.constant 0 : index
      %c0_73 = arith.constant 0 : index
      %352 = vector.load %arg1[%c0_72, %c0_73] : memref<128x128xf32, #tpu.memory_space<vmem>>, vector<128x128xf32>
      %cst_74 = arith.constant dense<0.000000e+00> : vector<1x128xf32>
      %353 = tpu.matmul %351, %352, %cst_74 {dimension_numbers = #tpu.dot_dimension_numbers<[1], [0], [0], [1], [0, 0, 1, 1], [], []>} : vector<1x128xf32>, vector<128x128xf32>, vector<1x128xf32> -> vector<1x128xf32>
      %354 = arith.mulf %5, %330 : vector<1x128xf32>
      %355 = arith.addf %4, %354 : vector<1x128xf32>
      %356 = arith.addf %353, %348 : vector<1x128xf32>
      %357 = arith.mulf %6, %356 : vector<1x128xf32>
      %358 = arith.addf %355, %357 : vector<1x128xf32>
      %359 = arith.addf %333, %339 : vector<1x128xf32>
      %360 = arith.subf %358, %359 : vector<1x128xf32>
      %361 = arith.negf %360 : vector<1x128xf32>
      %362 = math.exp %361 : vector<1x128xf32>
      %cst_75 = arith.constant 1.000000e+00 : f32
      %363 = vector.broadcast %cst_75 : f32 to vector<1x128xf32>
      %364 = arith.addf %363, %362 : vector<1x128xf32>
      %365 = arith.divf %363, %364 : vector<1x128xf32>
      %366 = arith.cmpf oge, %358, %359 : vector<1x128xf32>
      %367 = arith.extui %366 : vector<1x128xi1> to vector<1x128xi32>
      %368 = arith.sitofp %367 : vector<1x128xi32> to vector<1x128xf32>
      %cst_76 = arith.constant 1.000000e+00 : f32
      %369 = vector.broadcast %cst_76 : f32 to vector<1x128xf32>
      %370 = arith.subf %369, %368 : vector<1x128xf32>
      %371 = arith.mulf %7, %330 : vector<1x128xf32>
      %372 = arith.addf %8, %371 : vector<1x128xf32>
      %373 = arith.mulf %368, %372 : vector<1x128xf32>
      %374 = arith.mulf %370, %358 : vector<1x128xf32>
      %375 = arith.addf %373, %374 : vector<1x128xf32>
      %376 = arith.mulf %10, %333 : vector<1x128xf32>
      %377 = arith.mulf %368, %9 : vector<1x128xf32>
      %378 = arith.addf %376, %377 : vector<1x128xf32>
      %379 = arith.mulf %11, %375 : vector<1x128xf32>
      %380 = arith.mulf %12, %339 : vector<1x128xf32>
      %381 = arith.subf %379, %380 : vector<1x128xf32>
      %382 = arith.addf %381, %13 : vector<1x128xf32>
      %383 = arith.mulf %370, %382 : vector<1x128xf32>
      %384 = arith.addf %339, %383 : vector<1x128xf32>
      %385 = arith.mulf %14, %342 : vector<1x128xf32>
      %386 = arith.mulf %368, %15 : vector<1x128xf32>
      %387 = arith.addf %385, %386 : vector<1x128xf32>
      %388 = arith.mulf %370, %345 : vector<1x128xf32>
      %389 = arith.mulf %388, %16 : vector<1x128xf32>
      %390 = arith.addf %368, %389 : vector<1x128xf32>
      %391 = tpu.concatenate %50, %95, %140, %185, %230, %275, %320, %365 in 0 : vector<1x128xf32>, vector<1x128xf32>, vector<1x128xf32>, vector<1x128xf32>, vector<1x128xf32>, vector<1x128xf32>, vector<1x128xf32>, vector<1x128xf32> -> vector<8x128xf32>
      %392 = arith.index_cast %30 : i32 to index
      %c0_77 = arith.constant 0 : index
      %393 = vector.load %arg5[%392, %c0_77] : memref<128x128xf32, #tpu.memory_space<vmem>>, vector<8x128xf32>
      tpu.vector_store %arg5[%392, %c0_77], %391 {strides = array<i32>} : memref<128x128xf32, #tpu.memory_space<vmem>>, vector<8x128xf32>,
      scf.yield %375, %390, %378, %384, %387 : vector<1x128xf32>, vector<1x128xf32>, vector<1x128xf32>, vector<1x128xf32>, vector<1x128xf32>
    }
    %c16_i32_9 = arith.constant 16 : i32
    %c0_10 = arith.constant 0 : index
    %c0_11 = arith.constant 0 : index
    %24 = vector.load %arg6[%c0_10, %c0_11] : memref<8x128xf32, #tpu.memory_space<vmem>>, vector<1x128xf32>
    tpu.vector_store %arg6[%c0_10, %c0_11], %23#0 {strides = array<i32>} : memref<8x128xf32, #tpu.memory_space<vmem>>, vector<1x128xf32>,
    %c1_12 = arith.constant 1 : index
    %c0_13 = arith.constant 0 : index
    %25 = vector.load %arg6[%c1_12, %c0_13] : memref<8x128xf32, #tpu.memory_space<vmem>>, vector<1x128xf32>
    tpu.vector_store %arg6[%c1_12, %c0_13], %23#1 {strides = array<i32>} : memref<8x128xf32, #tpu.memory_space<vmem>>, vector<1x128xf32>,
    %c2_14 = arith.constant 2 : index
    %c0_15 = arith.constant 0 : index
    %26 = vector.load %arg6[%c2_14, %c0_15] : memref<8x128xf32, #tpu.memory_space<vmem>>, vector<1x128xf32>
    tpu.vector_store %arg6[%c2_14, %c0_15], %23#2 {strides = array<i32>} : memref<8x128xf32, #tpu.memory_space<vmem>>, vector<1x128xf32>,
    %c3_16 = arith.constant 3 : index
    %c0_17 = arith.constant 0 : index
    %27 = vector.load %arg6[%c3_16, %c0_17] : memref<8x128xf32, #tpu.memory_space<vmem>>, vector<1x128xf32>
    tpu.vector_store %arg6[%c3_16, %c0_17], %23#3 {strides = array<i32>} : memref<8x128xf32, #tpu.memory_space<vmem>>, vector<1x128xf32>,
    %c4_18 = arith.constant 4 : index
    %c0_19 = arith.constant 0 : index
    %28 = vector.load %arg6[%c4_18, %c0_19] : memref<8x128xf32, #tpu.memory_space<vmem>>, vector<1x128xf32>
    tpu.vector_store %arg6[%c4_18, %c0_19], %23#4 {strides = array<i32>} : memref<8x128xf32, #tpu.memory_space<vmem>>, vector<1x128xf32>,
    return
  }
  func.func @transform_0(%arg0: i32) -> (i32, i32) {
    %c0_i32 = arith.constant 0 : i32
    %c0_i32_0 = arith.constant 0 : i32
    %c0_i32_1 = arith.constant 0 : i32
    return %c0_i32, %c0_i32_0 : i32, i32
  }
  func.func @transform_1(%arg0: i32) -> (i32, i32) {
    %c0_i32 = arith.constant 0 : i32
    %c0_i32_0 = arith.constant 0 : i32
    %c0_i32_1 = arith.constant 0 : i32
    return %c0_i32, %c0_i32_0 : i32, i32
  }
  func.func @transform_2(%arg0: i32) -> (i32, i32) {
    %c0_i32 = arith.constant 0 : i32
    %c0_i32_0 = arith.constant 0 : i32
    %c0_i32_1 = arith.constant 0 : i32
    return %c0_i32, %c0_i32_0 : i32, i32
  }
  func.func @transform_3(%arg0: i32) -> (i32, i32) {
    %c0_i32 = arith.constant 0 : i32
    %c0_i32_0 = arith.constant 0 : i32
    return %arg0, %c0_i32 : i32, i32
  }
  func.func @transform_4(%arg0: i32) -> (i32, i32) {
    %c0_i32 = arith.constant 0 : i32
    %c0_i32_0 = arith.constant 0 : i32
    return %arg0, %c0_i32 : i32, i32
  }
  func.func @transform_5(%arg0: i32) -> (i32, i32) {
    %c0_i32 = arith.constant 0 : i32
    %c0_i32_0 = arith.constant 0 : i32
    %c0_i32_1 = arith.constant 0 : i32
    return %c0_i32, %c0_i32_0 : i32, i32
  }
}

</mosaic_0001>

<bundles_post_ra>
// kernel: mul.5
= control target key start
LH: loop header
LB: loop body
LE: loop exit
PB: predicated region body
PF: predicated region fallthrough
CT: control target
= control target key end

     0   :  { %s56_s0 = inlined_call_operand.vmem [shape: f32[12,12], index: 0, kind: input, shape index: {}]   ;;  %s57_s1 = inlined_call_operand.vmem [shape: f32[12,12], index: 1, kind: input, shape index: {}]   ;;  %s58_s2 = inlined_call_operand.vmem [shape: f32[12,12], index: 2, kind: output, shape index: {}]  }
   0x1   :  { %v3_v0 = vld [vmem:[%s56_s0] sm:$0xff]  ;;  %v20_v2 = vld [vmem:[%s56_s0 + $0x8] sm:$0xff] }
   0x2   :  { %v4_v1 = vld [vmem:[%s57_s1] sm:$0xff]  ;;  %v21_v4 = vld [vmem:[%s57_s1 + $0x8] sm:$0xff] }
   0x3   :  { %v7_v3 = vmul.f32 %v4_v1, %v3_v0  ;;  %v16_v5 = vmul.f32 %v21_v4, %v20_v2 }
   0x5   :  { %9 = vst [vmem:[%s58_s2] sm:$0xff] %v7_v3  ;;  %22 = vst [vmem:[%s58_s2 + $0x8] sm:$0xff] %v16_v5 }

// kernel: glif_forward.1
= control target key start
LH: loop header
LB: loop body
LE: loop exit
PB: predicated region body
PF: predicated region fallthrough
CT: control target
= control target key end

     0   :  { %11 = vsyncpa [#allocation3], 0  ;;  %s2392_s18 = smov 0   ;;  %s3148_s0 = inlined_call_operand.vmem [shape: f32[128,128], index: 0, kind: input, shape index: {}]   ;;  %s3149_s1 = inlined_call_operand.vmem [shape: f32[16,128], index: 1, kind: input, shape index: {}]   ;;  %s3150_s2 = inlined_call_operand.vmem [shape: f32[8,128], index: 2, kind: input, shape index: {}]   ;;  %s3151_s3 = inlined_call_operand.vmem [shape: f32[256,128], index: 3, kind: input, shape index: {}]   ;;  %s3152_s4 = inlined_call_operand.vmem [shape: f32[256,128], index: 4, kind: output, shape index: {0}]   ;;  %s3153_s5 = inlined_call_operand.hbm [shape: f32[8,128], index: 5, kind: output, shape index: {1}]  }
   0x1 LB: > { %s2398_s19 = sadd.s32 4294967295, %s2333_s18   ;;  %p1705_p0 = scmp.ge.s32.totalorder %s2333_s18, 1  ;;  %s2333_s18 = sphi %s2392_s18, %s17_s18  }
   0x2   : > { %p187_p1 = scmp.lt.s32.totalorder %s2333_s18, 3 }
   0x4   : > { %p188_p2 = pnand %p1705_p0, %p187_p1 }
   0x5   : > { %s1706_s20 = sshll.u32 (!%p188_p2), %s2398_s19, 4  ;;  %p1710_p4 = scmp.ne.s32.totalorder (!%p188_p2), %s2398_s19, 0 }
   0x6   : > { %191 = sbr.rel (%p188_p2) target bundleno = 1851 (0x73b), region = 36  ;;  %p216_p3 = scmp.lt.s32.totalorder (!%p188_p2), %s1706_s20, 31 }
   0xb   : > { %s3160_s20 = smov (!%p216_p3, %s1706_s20), 31  ;;  %230 = sbr.rel (%p1710_p4) target bundleno = 18 (0x12), region = 40 }
   0xc   : > { %s1707_s21 = sshll.u32 %s3160_s20, 3 }
   0xd   : > { %s2406_s24 = scalar_lea.vmem %s3151_s3, %s1707_s21  ;;  %s2411_s27 = scalar_lea.vmem %s3152_s4, %s1707_s21 }
  0x10   : > { %v231_v0 = vld [vmem:[%s3150_s2] sm:$0xff] }
  0x11   : > { %232 = vst [vmem:[#allocation2] sm:$0xff] %v231_v0 }
  0x12 PF: > { %v2420_v1 = vld [vmem:[%s3149_s1] sm:$0xff]  ;;  %v2425_v2 = vld [vmem:[%s3149_s1 + $0x8] sm:$0xff]  ;;  %s2437_s9 = smov 0  }
  0x18   : > { %v235_v3 = vld [vmem:[#allocation2] sm:$0x1]   ;;  %v236_v4 = vld [vmem:[#allocation2 + $0x1] sm:$0x1]   ;;  %v237_v5 = vld [vmem:[#allocation2 + $0x2] sm:$0x1]  }
  0x19   : > { %v238_v6 = vld [vmem:[#allocation2 + $0x3] sm:$0x1]   ;;  %v239_v7 = vld [vmem:[#allocation2 + $0x4] sm:$0x1]  }
  0x1a LB: >> { %v2460_v8 = vld [vmem:[%s3148_s0 + $0x78] sm:$0xff]  ;;  %v2359_v9 = vmov 0.0   ;;  %v2466_v10 = vld [vmem:[%s3148_s0 + $0x70] sm:$0xff]  ;;  %vm2360_vm0 = vmmov 0   ;;  %v2476_v11 = vld [vmem:[%s3148_s0 + $0x68] sm:$0xff]  ;;  %v254_v23 = vadd.f32 %v2337_v7, %v2349_v4  ;;  %s1711_s25 = sshll.u32 %s2357_s9, 3  ;;  %v2658_v41 = vadd.f32 %v2341_v6, %v2345_v5  ;;  %s2357_s9 = sphi %s2437_s9, %s245_s9   ;;  %v2353_v3 = vphi %v235_v3, %v3158_v3   ;;  %v2349_v4 = vphi %v236_v4, %v3157_v4   ;;  %v2345_v5 = vphi %v237_v5, %v3156_v5   ;;  %v2341_v6 = vphi %v238_v6, %v3155_v6   ;;  %v2337_v7 = vphi %v239_v7, %v3154_v7  }
  0x1b   : >> { %1882 = vmatprep.subr.mxu0 %v2359_v9  ;;  %1914 = vmatprep.mubr.msk.f32.mxu0 %vm2360_vm0, %v2359_v9  ;;  %v2485_v12 = vld [vmem:[%s3148_s0 + $0x60] sm:$0xff]  ;;  %v2494_v13 = vld [vmem:[%s3148_s0 + $0x58] sm:$0xff]  ;;  %v2503_v14 = vld [vmem:[%s3148_s0 + $0x50] sm:$0xff]  ;;  %v273_v27 = vrot.slane %v2353_v3, 7  ;;  %s2648_s26 = scalar_lea.vmem %s2406_s24, %s1711_s25  ;;  %v370_v28 = vrot.slane %v2353_v3, 5  ;;  %v2664_v44 = vrot.slane %v2425_v2, 3  ;;  %v399_v58 = vmul.f32 %v2341_v6, %v2425_v2 }
  0x1c   : >> { %1883 = vmatpush3.msra.mxu0 %v2460_v8  ;;  %1917 = vmatprep.subr.mxu1 %v2359_v9  ;;  %v2512_v15 = vld [vmem:[%s3148_s0 + $0x48] sm:$0xff]  ;;  %v2521_v16 = vld [vmem:[%s3148_s0 + $0x40] sm:$0xff]  ;;  %v2530_v17 = vld [vmem:[%s3148_s0 + $0x38] sm:$0xff]  ;;  %v255_v26 = vmul.f32 0.5, %v254_v23  ;;  %v384_v45 = vrot.slane %v2345_v5, 2  ;;  %v2668_v46 = vrot.slane %v2420_v1, 5 }
  0x1d   : >> { %1884 = vmatprep.subr.mxu0 %v2359_v9  ;;  %1918 = vmatpush3.msra.mxu1 %v2460_v8  ;;  %v2539_v18 = vld [vmem:[%s3148_s0 + $0x30] sm:$0xff]  ;;  %v2548_v19 = vld [vmem:[%s3148_s0 + $0x28] sm:$0xff]  ;;  %v2557_v20 = vld [vmem:[%s3148_s0 + $0x20] sm:$0xff]  ;;  %v275_v29 = vmul.f32 %v273_v27, %v2420_v1  ;;  %v372_v31 = vmul.f32 %v370_v28, %v2420_v1  ;;  %v414_v50 = vrot.slane %v2337_v7, 6  ;;  %v2678_v53 = vrot.slane %v2425_v2, 4  ;;  %s245_s9 = sadd.s32 1, %s2357_s9  }
  0x1e   : >> { %1885 = vmatpush3.msra.mxu0 %v2466_v10  ;;  %1919 = vmatprep.subr.mxu1 %v2359_v9  ;;  %v2566_v21 = vld [vmem:[%s3148_s0 + $0x18] sm:$0xff]  ;;  %v2575_v22 = vld [vmem:[%s3148_s0 + $0x10] sm:$0xff]  ;;  %v2586_v24 = vld [vmem:[%s3148_s0 + $0x8] sm:$0xff]  ;;  %v386_v54 = vmul.f32 %v384_v45, %v2420_v1  ;;  %v401_v7 = vrot.slane %v399_v58, 1  ;;  %v2694_v27 = vrot.slane %v2425_v2, 2  ;;  %vm1549_vm3 = vcmask 1040384  }
  0x1f   : >> { %1886 = vmatprep.subr.mxu0 %v2359_v9  ;;  %1920 = vmatpush3.msra.mxu1 %v2466_v10  ;;  %v2595_v25 = vld [vmem:[%s3148_s0] sm:$0xff]  ;;  %v277_v33 = vrot.slane %v275_v29, 1  ;;  %v374_v37 = vrot.slane %v372_v31, 7  ;;  %v416_v61 = vmul.f32 %v414_v50, %v2425_v2  ;;  %vm1551_vm5 = vcmask 1041408   ;;  %p242_p5 = scmp.ge.s32.totalorder %s245_s9, 16  }
  0x20   : >> { %1887 = vmatpush3.msra.mxu0 %v2476_v11  ;;  %1921 = vmatprep.subr.mxu1 %v2359_v9  ;;  %v253_v30 = vld [vmem:[%s2648_s26] sm:$0x1]  ;;  %vm1553_vm7 = vcmask 1042432   ;;  %vm1555_vm9 = vcmask 1043456   ;;  %vm1557_vm11 = vcmask 1044480   ;;  %vm1559_vm13 = vcmask 1045504  }
  0x21   : >> { %1888 = vmatprep.subr.mxu0 %v2359_v9  ;;  %1922 = vmatpush3.msra.mxu1 %v2476_v11  ;;  %v279_v38 = vadd.f32 %v277_v33, %v2420_v1  ;;  %v376_v42 = vadd.f32 %v374_v37, %v2420_v1  ;;  %vm1561_vm15 = vcmask 1046528   ;;  %p2166_p6 = scmp.eq.s32.totalorder (%p242_p5), %s2398_s19, 1 }
  0x22   : >> { %1889 = vmatpush3.msra.mxu0 %v2485_v12  ;;  %1923 = vmatprep.subr.mxu1 %v2359_v9 }
  0x23   : >> { %1890 = vmatprep.subr.mxu0 %v2359_v9  ;;  %1924 = vmatpush3.msra.mxu1 %v2485_v12  ;;  %v378_v48 = vrot.slane %v376_v42, 4 }
  0x24   : >> { %1891 = vmatpush3.msra.mxu0 %v2494_v13  ;;  %1925 = vmatprep.subr.mxu1 %v2359_v9 }
  0x25   : >> { %1892 = vmatprep.subr.mxu0 %v2359_v9  ;;  %1926 = vmatpush3.msra.mxu1 %v2494_v13 }
  0x26   : >> { %1893 = vmatpush3.msra.mxu0 %v2503_v14  ;;  %1927 = vmatprep.subr.mxu1 %v2359_v9 }
  0x27   : >> { %1894 = vmatprep.subr.mxu0 %v2359_v9  ;;  %1928 = vmatpush3.msra.mxu1 %v2503_v14 }
  0x28   : >> { %1895 = vmatpush3.msra.mxu0 %v2512_v15  ;;  %1929 = vmatprep.subr.mxu1 %v2359_v9 }
  0x29   : >> { %1896 = vmatprep.subr.mxu0 %v2359_v9  ;;  %1930 = vmatpush3.msra.mxu1 %v2512_v15 }
  0x2a   : >> { %1897 = vmatpush3.msra.mxu0 %v2521_v16  ;;  %1931 = vmatprep.subr.mxu1 %v2359_v9 }
  0x2b   : >> { %1898 = vmatprep.subr.mxu0 %v2359_v9  ;;  %1932 = vmatpush3.msra.mxu1 %v2521_v16 }
  0x2c   : >> { %1899 = vmatpush3.msra.mxu0 %v2530_v17  ;;  %1933 = vmatprep.subr.mxu1 %v2359_v9 }
  0x2d   : >> { %1900 = vmatprep.subr.mxu0 %v2359_v9  ;;  %1934 = vmatpush3.msra.mxu1 %v2530_v17 }
  0x2e   : >> { %1901 = vmatpush3.msra.mxu0 %v2539_v18  ;;  %1935 = vmatprep.subr.mxu1 %v2359_v9 }
  0x2f   : >> { %1902 = vmatprep.subr.mxu0 %v2359_v9  ;;  %1936 = vmatpush3.msra.mxu1 %v2539_v18 }
  0x30   : >> { %1903 = vmatpush3.msra.mxu0 %v2548_v19  ;;  %1937 = vmatprep.subr.mxu1 %v2359_v9 }
  0x31   : >> { %1904 = vmatprep.subr.mxu0 %v2359_v9  ;;  %1938 = vmatpush3.msra.mxu1 %v2548_v19 }
  0x32   : >> { %1905 = vmatpush3.msra.mxu0 %v2557_v20  ;;  %1939 = vmatprep.subr.mxu1 %v2359_v9 }
  0x33   : >> { %1906 = vmatprep.subr.mxu0 %v2359_v9  ;;  %1940 = vmatpush3.msra.mxu1 %v2557_v20 }
  0x34   : >> { %1907 = vmatpush3.msra.mxu0 %v2566_v21  ;;  %1941 = vmatprep.subr.mxu1 %v2359_v9 }
  0x35   : >> { %1908 = vmatprep.subr.mxu0 %v2359_v9  ;;  %1942 = vmatpush3.msra.mxu1 %v2566_v21 }
  0x36   : >> { %1909 = vmatpush3.msra.mxu0 %v2575_v22  ;;  %1943 = vmatprep.subr.mxu1 %v2359_v9 }
  0x37   : >> { %1910 = vmatprep.subr.mxu0 %v2359_v9  ;;  %1944 = vmatpush3.msra.mxu1 %v2575_v22 }
  0x38   : >> { %1911 = vmatpush3.msra.mxu0 %v2586_v24  ;;  %1945 = vmatprep.subr.mxu1 %v2359_v9 }
  0x39   : >> { %1912 = vmatprep.subr.mxu0 %v2359_v9  ;;  %1946 = vmatpush3.msra.mxu1 %v2586_v24 }
  0x3a   : >> { %1913 = vmatpush3.msra.mxu0 %v2595_v25  ;;  %1947 = vmatprep.subr.mxu1 %v2359_v9 }
  0x3b   : >> { %1915 = vmatmul.mubr.f32.vlgmr.msra.gmra.mxu0 %v255_v26  ;;  %1948 = vmatpush3.msra.mxu1 %v2595_v25 }
  0x3c   : >> { %1949 = vmatprep.mubr.msk.f32.mxu1 %vm2360_vm0, %v2359_v9  ;;  %1952 = vmatprep.subr.mxu0 %v2359_v9 }
  0x3d   : >> { %1953 = vmatpush3.msra.mxu0 %v2460_v8  ;;  %1984 = vmatprep.mubr.msk.f32.mxu0 %vm2360_vm0, %v2359_v9 }
  0x3e   : >> { %1954 = vmatprep.subr.mxu0 %v2359_v9  ;;  %1987 = vmatprep.subr.mxu1 %v2359_v9 }
  0x3f   : >> { %1955 = vmatpush3.msra.mxu0 %v2466_v10 }
  0x40   : >> { %1956 = vmatprep.subr.mxu0 %v2359_v9 }
  0x41   : >> { %1957 = vmatpush3.msra.mxu0 %v2476_v11 }
  0x42   : >> { %1958 = vmatprep.subr.mxu0 %v2359_v9 }
  0x43   : >> { %1959 = vmatpush3.msra.mxu0 %v2485_v12 }
  0x44   : >> { %1960 = vmatprep.subr.mxu0 %v2359_v9 }
  0x45   : >> { %1961 = vmatpush3.msra.mxu0 %v2494_v13 }
  0x46   : >> { %1962 = vmatprep.subr.mxu0 %v2359_v9 }
  0x47   : >> { %1963 = vmatpush3.msra.mxu0 %v2503_v14 }
  0x48   : >> { %1964 = vmatprep.subr.mxu0 %v2359_v9 }
  0x49   : >> { %1965 = vmatpush3.msra.mxu0 %v2512_v15 }
  0x4a   : >> { %1966 = vmatprep.subr.mxu0 %v2359_v9 }
  0x4b   : >> { %1967 = vmatpush3.msra.mxu0 %v2521_v16 }
  0x4c   : >> { %1968 = vmatprep.subr.mxu0 %v2359_v9 }
  0x4d   : >> { %1969 = vmatpush3.msra.mxu0 %v2530_v17 }
  0x4e   : >> { %1970 = vmatprep.subr.mxu0 %v2359_v9 }
  0x4f   : >> { %1971 = vmatpush3.msra.mxu0 %v2539_v18 }
  0x50   : >> { %1972 = vmatprep.subr.mxu0 %v2359_v9 }
  0x51   : >> { %1973 = vmatpush3.msra.mxu0 %v2548_v19 }
  0x52   : >> { %1974 = vmatprep.subr.mxu0 %v2359_v9 }
  0x53   : >> { %1975 = vmatpush3.msra.mxu0 %v2557_v20 }
  0x54   : >> { %1976 = vmatprep.subr.mxu0 %v2359_v9 }
  0x55   : >> { %1977 = vmatpush3.msra.mxu0 %v2566_v21 }
  0x56   : >> { %1978 = vmatprep.subr.mxu0 %v2359_v9 }
  0x57   : >> { %1979 = vmatpush3.msra.mxu0 %v2575_v22 }
  0x58   : >> { %1980 = vmatprep.subr.mxu0 %v2359_v9 }
  0x59   : >> { %1981 = vmatpush3.msra.mxu0 %v2586_v24 }
  0x5a   : >> { %1982 = vmatprep.subr.mxu0 %v2359_v9 }
  0x5b   : >> { %1983 = vmatpush3.msra.mxu0 %v2595_v25 }
  0x5c   : >> { %2022 = vmatprep.subr.mxu0 %v2359_v9 }
  0xfb   : >> { %v346_v32 = vpop.f32.mrf.mxu0 }
  0xfc   : >> { %v347_v34 = vadd.f32 %v346_v32, %v253_v30 }
  0xfd   : >> { %v1916_v35 = vpop.f32.mrf.mxu0 }
  0xfe   : >> { %v351_v36 = vrot.slane %v347_v34, 6 }
 0x100   : >> { %v353_v39 = vmul.f32 %v351_v36, %v2420_v1 }
 0x102   : >> { %v355_v40 = vrot.slane %v353_v39, 2  ;;  %v1715_v39 = vld [vmem:[%s2648_s26 + $0x1] sm:$0x1] }
 0x104   : >> { %v2661_v43 = vadd.f32 %v355_v40, %v279_v38 }
 0x106   : >> { %v359_v47 = vsub.f32 %v2661_v43, %v2658_v41  ;;  %vm366_vm1 = vcmp.ge.f32.partialorder %v2661_v43, %v2658_v41 }
 0x107   : >> { %v1713_v49 = vsel %vm366_vm1, 1.0, %v2359_v9 }
 0x108   : >> { %v369_v51 = vsub.f32 1.0, %v1713_v49  ;;  %v419_v52 = vmul.f32 %v1713_v49, %v2664_v44  ;;  %v390_v55 = vmul.f32 %v1713_v49, %v2668_v46  ;;  %v380_v56 = vmul.f32 %v1713_v49, %v378_v48 }
 0x10a   : >> { %v381_v57 = vmul.f32 %v369_v51, %v2661_v43  ;;  %v424_v59 = vmul.f32 %v2349_v4, %v369_v51  ;;  %v392_v60 = vrot.slane %v390_v55, 2  ;;  %v421_v63 = vrot.slane %v419_v52, 6 }
 0x10c   : >> { %v382_v62 = vadd.f32 %v381_v57, %v380_v56  ;;  %v427_v0 = vmul.f32 %v2678_v53, %v424_v59  ;;  %v2688_v3 = vadd.f32 %v392_v60, %v386_v54  ;;  %v2696_v28 = vadd.f32 %v421_v63, %v416_v61 }
 0x10d   : >> { %v1712_v59 = vmul.f32 -1.442695, %v359_v47 }
 0x10e   : >> { %v396_v5 = vrot.slane %v382_v62, 1  ;;  %v2690_v23 = vadd.f32 %v1713_v49, %v427_v0  ;;  %v543_v36 = vrot.slane %v382_v62, 5  ;;  %v437_v37 = vrot.slane %v382_v62, 7 }
 0x10f   : >> { %2227 = vpow2.f32 %v1712_v59 }
 0x110   : >> { %v398_v26 = vmul.f32 %v396_v5, %v2420_v1  ;;  %v433_v4 = vrot.slane %v2690_v23, 6  ;;  %v545_v40 = vmul.f32 %v543_v36, %v2420_v1  ;;  %v439_v42 = vmul.f32 %v437_v37, %v2420_v1 }
 0x112   : >> { %v403_v29 = vsub.f32 %v398_v26, %v401_v7  ;;  %v435_v30 = vadd.f32 %v433_v4, %v2696_v28  ;;  %v547_v54 = vrot.slane %v545_v40, 7 }
 0x114   : >> { %v407_v31 = vadd.f32 %v2694_v27, %v403_v29  ;;  %v436_v32 = vmul.f32 0.5, %v435_v30  ;;  %v549_v58 = vadd.f32 %v547_v54, %v2420_v1  ;;  %v577_v29 = vmul.f32 %v2696_v28, %v2425_v2 }
 0x116   : >> { %v409_v33 = vrot.slane %v407_v31, 7  ;;  %v445_v34 = vrot.slane %v436_v32, 2  ;;  %v551_v63 = vrot.slane %v549_v58, 4  ;;  %v556_v31 = vmul.f32 %v2688_v3, %v2420_v1 }
 0x118   : >> { %v411_v35 = vmul.f32 %v409_v33, %v369_v51  ;;  %1950 = vmatmul.mubr.f32.vlgmr.msra.gmra.mxu1 %v445_v34  ;;  %v441_v51 = vrot.slane %v439_v42, 1 }
 0x119   : >> { %1988 = vmatpush3.msra.mxu1 %v2460_v8  ;;  %2019 = vmatprep.mubr.msk.f32.mxu1 %vm2360_vm0, %v2359_v9 }
 0x11a   : >> { %1989 = vmatprep.subr.mxu1 %v2359_v9  ;;  %v2736_v38 = vadd.f32 %v2341_v6, %v411_v35  ;;  %v443_v6 = vadd.f32 %v441_v51, %v2420_v1 }
 0x11b   : >> { %1990 = vmatpush3.msra.mxu1 %v2466_v10 }
 0x11c   : >> { %1991 = vmatprep.subr.mxu1 %v2359_v9  ;;  %v526_v49 = vrot.slane %v2736_v38, 2  ;;  %v566_v33 = vmul.f32 %v2736_v38, %v2425_v2 }
 0x11d   : >> { %1992 = vmatpush3.msra.mxu1 %v2476_v11 }
 0x11e   : >> { %1993 = vmatprep.subr.mxu1 %v2359_v9  ;;  %v528_v56 = vadd.f32 %v526_v49, %v2688_v3  ;;  %v568_v40 = vrot.slane %v566_v33, 1 }
 0x11f   : >> { %1994 = vmatpush3.msra.mxu1 %v2485_v12 }
 0x120   : >> { %1995 = vmatprep.subr.mxu1 %v2359_v9  ;;  %v530_v61 = vrot.slane %v528_v56, 6 }
 0x121   : >> { %1996 = vmatpush3.msra.mxu1 %v2494_v13 }
 0x122   : >> { %1997 = vmatprep.subr.mxu1 %v2359_v9 }
 0x123   : >> { %1998 = vmatpush3.msra.mxu1 %v2503_v14 }
 0x124   : >> { %1999 = vmatprep.subr.mxu1 %v2359_v9 }
 0x125   : >> { %2000 = vmatpush3.msra.mxu1 %v2512_v15 }
 0x126   : >> { %2001 = vmatprep.subr.mxu1 %v2359_v9 }
 0x127   : >> { %2002 = vmatpush3.msra.mxu1 %v2521_v16 }
 0x128   : >> { %2003 = vmatprep.subr.mxu1 %v2359_v9 }
 0x129   : >> { %2004 = vmatpush3.msra.mxu1 %v2530_v17 }
 0x12a   : >> { %2005 = vmatprep.subr.mxu1 %v2359_v9 }
 0x12b   : >> { %2006 = vmatpush3.msra.mxu1 %v2539_v18 }
 0x12c   : >> { %2007 = vmatprep.subr.mxu1 %v2359_v9 }
 0x12d   : >> { %2008 = vmatpush3.msra.mxu1 %v2548_v19 }
 0x12e   : >> { %2009 = vmatprep.subr.mxu1 %v2359_v9 }
 0x12f   : >> { %2010 = vmatpush3.msra.mxu1 %v2557_v20 }
 0x130   : >> { %2011 = vmatprep.subr.mxu1 %v2359_v9 }
 0x131   : >> { %2012 = vmatpush3.msra.mxu1 %v2566_v21 }
 0x132   : >> { %2013 = vmatprep.subr.mxu1 %v2359_v9 }
 0x133   : >> { %2014 = vmatpush3.msra.mxu1 %v2575_v22 }
 0x134   : >> { %2015 = vmatprep.subr.mxu1 %v2359_v9 }
 0x135   : >> { %2016 = vmatpush3.msra.mxu1 %v2586_v24 }
 0x136   : >> { %2017 = vmatprep.subr.mxu1 %v2359_v9 }
 0x137   : >> { %2018 = vmatpush3.msra.mxu1 %v2595_v25 }
 0x138   : >> { %2057 = vmatprep.subr.mxu1 %v2359_v9 }
 0x1d8   : >> { %v513_v45 = vpop.f32.mrf.mxu1 }
 0x1d9   : >> { %v514_v48 = vadd.f32 %v1715_v39, %v513_v45 }
 0x1da   : >> { %v1951_v50 = vpop.f32.mrf.mxu1 }
 0x1db   : >> { %v518_v52 = vrot.slane %v514_v48, 6  ;;  %v2228_v48 = vpop.eup %2227 }
 0x1dd   : >> { %v520_v55 = vmul.f32 %v518_v52, %v2420_v1 }
 0x1df   : >> { %v522_v57 = vrot.slane %v520_v55, 2  ;;  %v363_v55 = vadd.f32 1.0, %v2228_v48 }
 0x1e1   : >> { %v524_v60 = vadd.f32 %v522_v57, %v443_v6 }
 0x1e3   : >> { %v532_v62 = vsub.f32 %v524_v60, %v530_v61  ;;  %vm539_vm2 = vcmp.ge.f32.partialorder %v524_v60, %v530_v61 }
 0x1e4   : >> { %v1717_v0 = vsel %vm539_vm2, 1.0, %v2359_v9 }
 0x1e5   : >> { %v1716_v5 = vmul.f32 -1.442695, %v532_v62  ;;  %v542_v7 = vsub.f32 1.0, %v1717_v0  ;;  %v553_v26 = vmul.f32 %v1717_v0, %v551_v63  ;;  %v578_v4 = vmul.f32 %v1717_v0, %v2664_v44 }
 0x1e6   : >> { %v557_v30 = vmul.f32 %v1717_v0, %v2668_v46 }
 0x1e7   : >> { %2229 = vpow2.f32 %v1716_v5  ;;  %v554_v41 = vmul.f32 %v542_v7, %v524_v60  ;;  %v580_v43 = vrot.slane %v578_v4, 6  ;;  %v583_v47 = vmul.f32 %v542_v7, %v2690_v23 }
 0x1e8   : >> { %v559_v32 = vrot.slane %v557_v30, 2 }
 0x1e9   : >> { %v2759_v34 = vadd.f32 %v554_v41, %v553_v26  ;;  %v2761_v35 = vadd.f32 %v580_v43, %v577_v29  ;;  %v584_v28 = vmul.f32 %v583_v47, %v2678_v53 }
 0x1ea   : >> { %v2764_v36 = vadd.f32 %v559_v32, %v556_v31 }
 0x1eb   : >> { %v563_v37 = vrot.slane %v2759_v34, 1  ;;  %v2767_v39 = vadd.f32 %v1717_v0, %v584_v28  ;;  %v700_v61 = vrot.slane %v2759_v34, 5  ;;  %v594_v62 = vrot.slane %v2759_v34, 7  ;;  %v1719_v0 = vld [vmem:[%s2648_s26 + $0x2] sm:$0x1] }
 0x1ed   : >> { %v565_v23 = vmul.f32 %v563_v37, %v2420_v1  ;;  %v590_v3 = vrot.slane %v2767_v39, 6  ;;  %v702_v5 = vmul.f32 %v700_v61, %v2420_v1 }
 0x1ef   : >> { %v570_v42 = vsub.f32 %v565_v23, %v568_v40  ;;  %v592_v45 = vadd.f32 %v590_v3, %v2761_v35  ;;  %v704_v47 = vrot.slane %v702_v5, 7 }
 0x1f1   : >> { %v571_v49 = vadd.f32 %v570_v42, %v2694_v27  ;;  %v593_v50 = vmul.f32 0.5, %v592_v45  ;;  %v706_v34 = vadd.f32 %v704_v47, %v2420_v1 }
 0x1f3   : >> { %v573_v51 = vrot.slane %v571_v49, 7  ;;  %v602_v52 = vrot.slane %v593_v50, 2  ;;  %v708_v40 = vrot.slane %v706_v34, 4  ;;  %v734_v50 = vmul.f32 %v2761_v35, %v2425_v2 }
 0x1f4   : >> { %v2230_v54 = vpop.eup %2229 }
 0x1f5   : >> { %v536_v56 = vadd.f32 1.0, %v2230_v54  ;;  %v575_v6 = vmul.f32 %v573_v51, %v542_v7  ;;  %1985 = vmatmul.mubr.f32.vlgmr.msra.gmra.mxu0 %v602_v52  ;;  %v596_v7 = vmul.f32 %v594_v62, %v2420_v1 }
 0x1f6   : >> { %2023 = vmatpush3.msra.mxu0 %v2460_v8  ;;  %2054 = vmatprep.mubr.msk.f32.mxu0 %vm2360_vm0, %v2359_v9 }
 0x1f7   : >> { %2231 = vrcp.f32 %v536_v56  ;;  %2024 = vmatprep.subr.mxu0 %v2359_v9  ;;  %v2812_v63 = vadd.f32 %v575_v6, %v2736_v38  ;;  %v598_v41 = vrot.slane %v596_v7, 1  ;;  %v713_v56 = vmul.f32 %v2764_v36, %v2420_v1 }
 0x1f8   : >> { %2025 = vmatpush3.msra.mxu0 %v2466_v10  ;;  %2233 = vrcp.f32 %v363_v55 }
 0x1f9   : >> { %2026 = vmatprep.subr.mxu0 %v2359_v9  ;;  %v683_v29 = vrot.slane %v2812_v63, 2  ;;  %v600_v38 = vadd.f32 %v598_v41, %v2420_v1 }
 0x1fa   : >> { %2027 = vmatpush3.msra.mxu0 %v2476_v11 }
 0x1fb   : >> { %2028 = vmatprep.subr.mxu0 %v2359_v9  ;;  %v685_v32 = vadd.f32 %v683_v29, %v2764_v36 }
 0x1fc   : >> { %2029 = vmatpush3.msra.mxu0 %v2485_v12 }
 0x1fd   : >> { %2030 = vmatprep.subr.mxu0 %v2359_v9  ;;  %v687_v37 = vrot.slane %v685_v32, 6 }
 0x1fe   : >> { %2031 = vmatpush3.msra.mxu0 %v2494_v13 }
 0x1ff   : >> { %2032 = vmatprep.subr.mxu0 %v2359_v9 }
 0x200   : >> { %2033 = vmatpush3.msra.mxu0 %v2503_v14 }
 0x201   : >> { %2034 = vmatprep.subr.mxu0 %v2359_v9 }
 0x202   : >> { %2035 = vmatpush3.msra.mxu0 %v2512_v15 }
 0x203   : >> { %2036 = vmatprep.subr.mxu0 %v2359_v9 }
 0x204   : >> { %v2232_v57 = vpop.eup %2231  ;;  %2037 = vmatpush3.msra.mxu0 %v2521_v16 }
 0x205   : >> { %v1529_v58 = vrot.slane %v2232_v57, 7  ;;  %2038 = vmatprep.subr.mxu0 %v2359_v9  ;;  %v2234_v59 = vpop.eup %2233 }
 0x206   : >> { %2039 = vmatpush3.msra.mxu0 %v2530_v17 }
 0x207   : >> { %v2792_v60 = vsel %vm1549_vm3, %v2234_v59, %v1529_v58  ;;  %2040 = vmatprep.subr.mxu0 %v2359_v9  ;;  %v723_v58 = vmul.f32 %v2812_v63, %v2425_v2 }
 0x208   : >> { %2041 = vmatpush3.msra.mxu0 %v2539_v18 }
 0x209   : >> { %2042 = vmatprep.subr.mxu0 %v2359_v9  ;;  %v725_v5 = vrot.slane %v723_v58, 1 }
 0x20a   : >> { %2043 = vmatpush3.msra.mxu0 %v2548_v19 }
 0x20b   : >> { %2044 = vmatprep.subr.mxu0 %v2359_v9 }
 0x20c   : >> { %2045 = vmatpush3.msra.mxu0 %v2557_v20 }
 0x20d   : >> { %2046 = vmatprep.subr.mxu0 %v2359_v9 }
 0x20e   : >> { %2047 = vmatpush3.msra.mxu0 %v2566_v21 }
 0x20f   : >> { %2048 = vmatprep.subr.mxu0 %v2359_v9 }
 0x210   : >> { %2049 = vmatpush3.msra.mxu0 %v2575_v22 }
 0x211   : >> { %2050 = vmatprep.subr.mxu0 %v2359_v9 }
 0x212   : >> { %2051 = vmatpush3.msra.mxu0 %v2586_v24 }
 0x213   : >> { %2052 = vmatprep.subr.mxu0 %v2359_v9 }
 0x214   : >> { %2053 = vmatpush3.msra.mxu0 %v2595_v25 }
 0x215   : >> { %2092 = vmatprep.subr.mxu0 %v2359_v9 }
 0x2b5   : >> { %v670_v26 = vpop.f32.mrf.mxu0 }
 0x2b6   : >> { %v671_v4 = vadd.f32 %v1719_v0, %v670_v26 }
 0x2b7   : >> { %v1986_v30 = vpop.f32.mrf.mxu0 }
 0x2b8   : >> { %v675_v43 = vrot.slane %v671_v4, 6 }
 0x2ba   : >> { %v677_v31 = vmul.f32 %v675_v43, %v2420_v1 }
 0x2bc   : >> { %v679_v33 = vrot.slane %v677_v31, 2 }
 0x2be   : >> { %v681_v28 = vadd.f32 %v679_v33, %v600_v38 }
 0x2c0   : >> { %v689_v23 = vsub.f32 %v681_v28, %v687_v37  ;;  %vm696_vm4 = vcmp.ge.f32.partialorder %v681_v28, %v687_v37  ;;  %v1723_v37 = vld [vmem:[%s2648_s26 + $0x3] sm:$0x1] }
 0x2c1   : >> { %v1721_v3 = vsel %vm696_vm4, 1.0, %v2359_v9 }
 0x2c2   : >> { %v1720_v42 = vmul.f32 -1.442695, %v689_v23  ;;  %v699_v45 = vsub.f32 1.0, %v1721_v3  ;;  %v710_v48 = vmul.f32 %v1721_v3, %v708_v40  ;;  %v735_v49 = vmul.f32 %v1721_v3, %v2664_v44 }
 0x2c3   : >> { %v714_v51 = vmul.f32 %v1721_v3, %v2668_v46 }
 0x2c4   : >> { %2235 = vpow2.f32 %v1720_v42  ;;  %v711_v52 = vmul.f32 %v699_v45, %v681_v28  ;;  %v737_v54 = vrot.slane %v735_v49, 6  ;;  %v740_v55 = vmul.f32 %v699_v45, %v2767_v39 }
 0x2c5   : >> { %v716_v6 = vrot.slane %v714_v51, 2 }
 0x2c6   : >> { %v2830_v57 = vadd.f32 %v711_v52, %v710_v48  ;;  %v2834_v59 = vadd.f32 %v737_v54, %v734_v50  ;;  %v741_v35 = vmul.f32 %v740_v55, %v2678_v53 }
 0x2c7   : >> { %v2837_v61 = vadd.f32 %v716_v6, %v713_v56 }
 0x2c8   : >> { %v720_v62 = vrot.slane %v2830_v57, 1  ;;  %v2840_v0 = vadd.f32 %v1721_v3, %v741_v35  ;;  %v751_v34 = vrot.slane %v2830_v57, 7 }
 0x2ca   : >> { %v722_v39 = vmul.f32 %v720_v62, %v2420_v1  ;;  %v747_v36 = vrot.slane %v2840_v0, 6  ;;  %v753_v40 = vmul.f32 %v751_v34, %v2420_v1 }
 0x2cc   : >> { %v727_v7 = vsub.f32 %v722_v39, %v725_v5  ;;  %v749_v26 = vadd.f32 %v747_v36, %v2834_v59  ;;  %v755_v49 = vrot.slane %v753_v40, 1 }
 0x2ce   : >> { %v728_v4 = vadd.f32 %v727_v7, %v2694_v27  ;;  %v750_v29 = vmul.f32 0.5, %v749_v26  ;;  %v891_v26 = vmul.f32 %v2834_v59, %v2425_v2 }
 0x2d0   : >> { %v730_v30 = vrot.slane %v728_v4, 7  ;;  %v759_v41 = vrot.slane %v750_v29, 2 }
 0x2d1   : >> { %v2236_v43 = vpop.eup %2235 }
 0x2d2   : >> { %v693_v47 = vadd.f32 1.0, %v2236_v43  ;;  %v732_v31 = vmul.f32 %v730_v30, %v699_v45  ;;  %2020 = vmatmul.mubr.f32.vlgmr.msra.gmra.mxu1 %v759_v41  ;;  %v870_v43 = vmul.f32 %v2837_v61, %v2420_v1 }
 0x2d3   : >> { %2058 = vmatpush3.msra.mxu1 %v2460_v8  ;;  %2089 = vmatprep.mubr.msk.f32.mxu1 %vm2360_vm0, %v2359_v9 }
 0x2d4   : >> { %2237 = vrcp.f32 %v693_v47  ;;  %2059 = vmatprep.subr.mxu1 %v2359_v9  ;;  %v2886_v28 = vadd.f32 %v732_v31, %v2812_v63  ;;  %v757_v63 = vadd.f32 %v755_v49, %v2420_v1 }
 0x2d5   : >> { %2060 = vmatpush3.msra.mxu1 %v2466_v10 }
 0x2d6   : >> { %2061 = vmatprep.subr.mxu1 %v2359_v9  ;;  %v840_v45 = vrot.slane %v2886_v28, 2 }
 0x2d7   : >> { %2062 = vmatpush3.msra.mxu1 %v2476_v11 }
 0x2d8   : >> { %2063 = vmatprep.subr.mxu1 %v2359_v9  ;;  %v842_v54 = vadd.f32 %v840_v45, %v2837_v61 }
 0x2d9   : >> { %2064 = vmatpush3.msra.mxu1 %v2485_v12 }
 0x2da   : >> { %2065 = vmatprep.subr.mxu1 %v2359_v9 }
 0x2db   : >> { %2066 = vmatpush3.msra.mxu1 %v2494_v13 }
 0x2dc   : >> { %2067 = vmatprep.subr.mxu1 %v2359_v9 }
 0x2dd   : >> { %2068 = vmatpush3.msra.mxu1 %v2503_v14 }
 0x2de   : >> { %2069 = vmatprep.subr.mxu1 %v2359_v9 }
 0x2df   : >> { %2070 = vmatpush3.msra.mxu1 %v2512_v15 }
 0x2e0   : >> { %2071 = vmatprep.subr.mxu1 %v2359_v9 }
 0x2e1   : >> { %v2238_v32 = vpop.eup %2237  ;;  %2072 = vmatpush3.msra.mxu1 %v2521_v16 }
 0x2e2   : >> { %v1532_v38 = vrot.slane %v2238_v32, 6  ;;  %2073 = vmatprep.subr.mxu1 %v2359_v9  ;;  %v880_v32 = vmul.f32 %v2886_v28, %v2425_v2 }
 0x2e3   : >> { %2074 = vmatpush3.msra.mxu1 %v2530_v17 }
 0x2e4   : >> { %v2866_v33 = vsel %vm1551_vm5, %v2792_v60, %v1532_v38  ;;  %2075 = vmatprep.subr.mxu1 %v2359_v9  ;;  %v857_v60 = vrot.slane %v2830_v57, 5  ;;  %v844_v57 = vrot.slane %v842_v54, 6 }
 0x2e5   : >> { %2076 = vmatpush3.msra.mxu1 %v2539_v18 }
 0x2e6   : >> { %2077 = vmatprep.subr.mxu1 %v2359_v9  ;;  %v859_v23 = vmul.f32 %v857_v60, %v2420_v1 }
 0x2e7   : >> { %2078 = vmatpush3.msra.mxu1 %v2548_v19 }
 0x2e8   : >> { %2079 = vmatprep.subr.mxu1 %v2359_v9  ;;  %v861_v51 = vrot.slane %v859_v23, 7  ;;  %v882_v23 = vrot.slane %v880_v32, 1 }
 0x2e9   : >> { %2080 = vmatpush3.msra.mxu1 %v2557_v20 }
 0x2ea   : >> { %2081 = vmatprep.subr.mxu1 %v2359_v9  ;;  %v863_v56 = vadd.f32 %v861_v51, %v2420_v1 }
 0x2eb   : >> { %2082 = vmatpush3.msra.mxu1 %v2566_v21 }
 0x2ec   : >> { %2083 = vmatprep.subr.mxu1 %v2359_v9  ;;  %v865_v35 = vrot.slane %v863_v56, 4 }
 0x2ed   : >> { %2084 = vmatpush3.msra.mxu1 %v2575_v22 }
 0x2ee   : >> { %2085 = vmatprep.subr.mxu1 %v2359_v9 }
 0x2ef   : >> { %2086 = vmatpush3.msra.mxu1 %v2586_v24 }
 0x2f0   : >> { %2087 = vmatprep.subr.mxu1 %v2359_v9 }
 0x2f1   : >> { %2088 = vmatpush3.msra.mxu1 %v2595_v25 }
 0x2f2   : >> { %2127 = vmatprep.subr.mxu1 %v2359_v9 }
 0x392   : >> { %v827_v3 = vpop.f32.mrf.mxu1 }
 0x393   : >> { %v828_v42 = vadd.f32 %v1723_v37, %v827_v3 }
 0x394   : >> { %v2021_v48 = vpop.f32.mrf.mxu1 }
 0x395   : >> { %v832_v50 = vrot.slane %v828_v42, 6 }
 0x397   : >> { %v834_v52 = vmul.f32 %v832_v50, %v2420_v1 }
 0x399   : >> { %v836_v55 = vrot.slane %v834_v52, 2 }
 0x39b   : >> { %v838_v6 = vadd.f32 %v836_v55, %v757_v63 }
 0x39d   : >> { %v846_v58 = vsub.f32 %v838_v6, %v844_v57  ;;  %vm853_vm6 = vcmp.ge.f32.partialorder %v838_v6, %v844_v57 }
 0x39e   : >> { %v1725_v62 = vsel %vm853_vm6, 1.0, %v2359_v9 }
 0x39f   : >> { %v1724_v39 = vmul.f32 -1.442695, %v846_v58  ;;  %v856_v5 = vsub.f32 1.0, %v1725_v62  ;;  %v867_v36 = vmul.f32 %v1725_v62, %v865_v35  ;;  %v892_v7 = vmul.f32 %v1725_v62, %v2664_v44 }
 0x3a0   : >> { %v871_v4 = vmul.f32 %v1725_v62, %v2668_v46 }
 0x3a1   : >> { %2239 = vpow2.f32 %v1724_v39  ;;  %v868_v29 = vmul.f32 %v856_v5, %v838_v6  ;;  %v894_v30 = vrot.slane %v892_v7, 6  ;;  %v897_v41 = vmul.f32 %v856_v5, %v2840_v0 }
 0x3a2   : >> { %v873_v47 = vrot.slane %v871_v4, 2 }
 0x3a3   : >> { %v2904_v31 = vadd.f32 %v868_v29, %v867_v36  ;;  %v2908_v38 = vadd.f32 %v894_v30, %v891_v26  ;;  %v898_v59 = vmul.f32 %v897_v41, %v2678_v53 }
 0x3a4   : >> { %v2911_v60 = vadd.f32 %v873_v47, %v870_v43 }
 0x3a5   : >> { %v877_v34 = vrot.slane %v2904_v31, 1  ;;  %v2914_v37 = vadd.f32 %v1725_v62, %v898_v59  ;;  %v1048_v7 = vmul.f32 %v2908_v38, %v2425_v2 }
 0x3a6   : >> { %v1027_v41 = vmul.f32 %v2911_v60, %v2420_v1 }
 0x3a7   : >> { %v879_v0 = vmul.f32 %v877_v34, %v2420_v1  ;;  %v904_v61 = vrot.slane %v2914_v37, 6 }
 0x3a9   : >> { %v884_v40 = vsub.f32 %v879_v0, %v882_v23  ;;  %v906_v3 = vadd.f32 %v904_v61, %v2908_v38 }
 0x3ab   : >> { %v885_v42 = vadd.f32 %v884_v40, %v2694_v27  ;;  %v907_v45 = vmul.f32 0.5, %v906_v3 }
 0x3ad   : >> { %v887_v48 = vrot.slane %v885_v42, 7  ;;  %v916_v49 = vrot.slane %v907_v45, 2 }
 0x3ae   : >> { %v2240_v50 = vpop.eup %2239 }
 0x3af   : >> { %v850_v51 = vadd.f32 1.0, %v2240_v50  ;;  %v889_v52 = vmul.f32 %v887_v48, %v856_v5  ;;  %2055 = vmatmul.mubr.f32.vlgmr.msra.gmra.mxu0 %v916_v49 }
 0x3b0   : >> { %2093 = vmatpush3.msra.mxu0 %v2460_v8  ;;  %2124 = vmatprep.mubr.msk.f32.mxu0 %vm2360_vm0, %v2359_v9 }
 0x3b1   : >> { %2241 = vrcp.f32 %v850_v51  ;;  %2094 = vmatprep.subr.mxu0 %v2359_v9 }
 0x3b2   : >> { %2095 = vmatpush3.msra.mxu0 %v2466_v10 }
 0x3b3   : >> { %2096 = vmatprep.subr.mxu0 %v2359_v9 }
 0x3b4   : >> { %2097 = vmatpush3.msra.mxu0 %v2476_v11 }
 0x3b5   : >> { %2098 = vmatprep.subr.mxu0 %v2359_v9 }
 0x3b6   : >> { %2099 = vmatpush3.msra.mxu0 %v2485_v12  ;;  %v1014_v12 = vrot.slane %v2904_v31, 5 }
 0x3b7   : >> { %2100 = vmatprep.subr.mxu0 %v2359_v9 }
 0x3b8   : >> { %2101 = vmatpush3.msra.mxu0 %v2494_v13  ;;  %v908_v13 = vrot.slane %v2904_v31, 7 }
 0x3b9   : >> { %2102 = vmatprep.subr.mxu0 %v2359_v9 }
 0x3ba   : >> { %2103 = vmatpush3.msra.mxu0 %v2503_v14  ;;  %v2959_v14 = vadd.f32 %v889_v52, %v2886_v28  ;;  %v2259_v52 = vld [vmem:[%s3148_s0 + $0x78] sm:$0xff] }
 0x3bb   : >> { %2104 = vmatprep.subr.mxu0 %v2359_v9 }
 0x3bc   : >> { %2105 = vmatpush3.msra.mxu0 %v2512_v15  ;;  %v1727_v15 = vld [vmem:[%s2648_s26 + $0x4] sm:$0x1]  ;;  %v1037_v31 = vmul.f32 %v2959_v14, %v2425_v2 }
 0x3bd   : >> { %2106 = vmatprep.subr.mxu0 %v2359_v9 }
 0x3be   : >> { %v2242_v8 = vpop.eup %2241  ;;  %2107 = vmatpush3.msra.mxu0 %v2521_v16  ;;  %v1016_v16 = vmul.f32 %v1014_v12, %v2420_v1  ;;  %v1039_v23 = vrot.slane %v1037_v31, 1  ;;  %v2262_v12 = vld [vmem:[%s3148_s0 + $0x60] sm:$0xff] }
 0x3bf   : >> { %v1535_v10 = vrot.slane %v2242_v8, 5  ;;  %2108 = vmatprep.subr.mxu0 %v2359_v9  ;;  %v2260_v8 = vld [vmem:[%s3148_s0 + $0x70] sm:$0xff] }
 0x3c0   : >> { %2109 = vmatpush3.msra.mxu0 %v2530_v17  ;;  %v910_v17 = vmul.f32 %v908_v13, %v2420_v1  ;;  %v2263_v13 = vld [vmem:[%s3148_s0 + $0x58] sm:$0xff] }
 0x3c1   : >> { %v2940_v11 = vsel %vm1553_vm7, %v2866_v33, %v1535_v10  ;;  %2110 = vmatprep.subr.mxu0 %v2359_v9  ;;  %v2261_v10 = vld [vmem:[%s3148_s0 + $0x68] sm:$0xff] }
 0x3c2   : >> { %2111 = vmatpush3.msra.mxu0 %v2539_v18 }
 0x3c3   : >> { %2112 = vmatprep.subr.mxu0 %v2359_v9 }
 0x3c4   : >> { %2113 = vmatpush3.msra.mxu0 %v2548_v19 }
 0x3c5   : >> { %2114 = vmatprep.subr.mxu0 %v2359_v9 }
 0x3c6   : >> { %2115 = vmatpush3.msra.mxu0 %v2557_v20  ;;  %v997_v20 = vrot.slane %v2959_v14, 2 }
 0x3c7   : >> { %2116 = vmatprep.subr.mxu0 %v2359_v9 }
 0x3c8   : >> { %2117 = vmatpush3.msra.mxu0 %v2566_v21  ;;  %v999_v54 = vadd.f32 %v997_v20, %v2911_v60  ;;  %v2267_v20 = vld [vmem:[%s3148_s0 + $0x38] sm:$0xff] }
 0x3c9   : >> { %2118 = vmatprep.subr.mxu0 %v2359_v9 }
 0x3ca   : >> { %2119 = vmatpush3.msra.mxu0 %v2575_v22  ;;  %v912_v22 = vrot.slane %v910_v17, 1  ;;  %v1001_v6 = vrot.slane %v999_v54, 6  ;;  %v2273_v54 = vld [vmem:[%s3148_s0 + $0x8] sm:$0xff] }
 0x3cb   : >> { %2120 = vmatprep.subr.mxu0 %v2359_v9 }
 0x3cc   : >> { %2121 = vmatpush3.msra.mxu0 %v2586_v24  ;;  %v914_v28 = vadd.f32 %v912_v22, %v2420_v1  ;;  %v2268_v22 = vld [vmem:[%s3148_s0 + $0x30] sm:$0xff] }
 0x3cd   : >> { %2122 = vmatprep.subr.mxu0 %v2359_v9 }
 0x3ce   : >> { %2123 = vmatpush3.msra.mxu0 %v2595_v25  ;;  %v1018_v25 = vrot.slane %v1016_v16, 7  ;;  %v2265_v16 = vld [vmem:[%s3148_s0 + $0x48] sm:$0xff] }
 0x3d0   : >> { %v1020_v55 = vadd.f32 %v1018_v25, %v2420_v1  ;;  %v2271_v25 = vld [vmem:[%s3148_s0 + $0x18] sm:$0xff] }
 0x3d2   : >> { %v1022_v58 = vrot.slane %v1020_v55, 4 }
 0x46f   : >> { %v984_v18 = vpop.f32.mrf.mxu0 }
 0x470   : >> { %v985_v19 = vadd.f32 %v1727_v15, %v984_v18  ;;  %v2264_v15 = vld [vmem:[%s3148_s0 + $0x50] sm:$0xff]  ;;  %v2266_v18 = vld [vmem:[%s3148_s0 + $0x40] sm:$0xff] }
 0x471   : >> { %v2056_v21 = vpop.f32.mrf.mxu0 }
 0x472   : >> { %v989_v24 = vrot.slane %v985_v19, 6 }
 0x474   : >> { %v991_v33 = vmul.f32 %v989_v24, %v2420_v1  ;;  %v2269_v24 = vld [vmem:[%s3148_s0 + $0x28] sm:$0xff] }
 0x476   : >> { %v993_v63 = vrot.slane %v991_v33, 2  ;;  %v2272_v33 = vld [vmem:[%s3148_s0 + $0x10] sm:$0xff] }
 0x478   : >> { %v995_v56 = vadd.f32 %v993_v63, %v914_v28  ;;  %v2274_v28 = vld [vmem:[%s3148_s0] sm:$0xff] }
 0x47a   : >> { %v1003_v57 = vsub.f32 %v995_v56, %v1001_v6  ;;  %vm1010_vm8 = vcmp.ge.f32.partialorder %v995_v56, %v1001_v6  ;;  %v1731_v6 = vld [vmem:[%s2648_s26 + $0x5] sm:$0x1] }
 0x47b   : >> { %v1729_v35 = vsel %vm1010_vm8, 1.0, %v2359_v9 }
 0x47c   : >> { %v1728_v62 = vmul.f32 -1.442695, %v1003_v57  ;;  %v1013_v39 = vsub.f32 1.0, %v1729_v35  ;;  %v1024_v5 = vmul.f32 %v1729_v35, %v1022_v58  ;;  %v1049_v36 = vmul.f32 %v1729_v35, %v2664_v44 }
 0x47d   : >> { %v1028_v26 = vmul.f32 %v1729_v35, %v2668_v46 }
 0x47e   : >> { %2243 = vpow2.f32 %v1728_v62  ;;  %v1025_v4 = vmul.f32 %v1013_v39, %v995_v56  ;;  %v1051_v29 = vrot.slane %v1049_v36, 6  ;;  %v1054_v30 = vmul.f32 %v1013_v39, %v2914_v37 }
 0x47f   : >> { %v1030_v43 = vrot.slane %v1028_v26, 2 }
 0x480   : >> { %v2977_v47 = vadd.f32 %v1025_v4, %v1024_v5  ;;  %v2981_v32 = vadd.f32 %v1051_v29, %v1048_v7  ;;  %v1055_v38 = vmul.f32 %v1054_v30, %v2678_v53 }
 0x481   : >> { %v2984_v59 = vadd.f32 %v1030_v43, %v1027_v41 }
 0x482   : >> { %v1034_v34 = vrot.slane %v2977_v47, 1  ;;  %v2987_v0 = vadd.f32 %v1729_v35, %v1055_v38  ;;  %v1171_v63 = vrot.slane %v2977_v47, 5  ;;  %v1065_v55 = vrot.slane %v2977_v47, 7 }
 0x484   : >> { %v1036_v37 = vmul.f32 %v1034_v34, %v2420_v1  ;;  %v1061_v60 = vrot.slane %v2987_v0, 6  ;;  %v1173_v57 = vmul.f32 %v1171_v63, %v2420_v1  ;;  %v1067_v58 = vmul.f32 %v1065_v55, %v2420_v1 }
 0x486   : >> { %v1041_v61 = vsub.f32 %v1036_v37, %v1039_v23  ;;  %v1063_v40 = vadd.f32 %v1061_v60, %v2981_v32  ;;  %v1069_v36 = vrot.slane %v1067_v58, 1  ;;  %v1175_v26 = vrot.slane %v1173_v57, 7  ;;  %v1735_v57 = vld [vmem:[%s2648_s26 + $0x6] sm:$0x1] }
 0x488   : >> { %v1042_v3 = vadd.f32 %v1041_v61, %v2694_v27  ;;  %v1064_v42 = vmul.f32 0.5, %v1063_v40  ;;  %v1071_v30 = vadd.f32 %v1069_v36, %v2420_v1  ;;  %v1205_v40 = vmul.f32 %v2981_v32, %v2425_v2 }
 0x48a   : >> { %v1044_v45 = vrot.slane %v1042_v3, 7  ;;  %v1073_v48 = vrot.slane %v1064_v42, 2 }
 0x48b   : >> { %v2244_v49 = vpop.eup %2243 }
 0x48c   : >> { %v1007_v50 = vadd.f32 1.0, %v2244_v49  ;;  %v1046_v51 = vmul.f32 %v1044_v45, %v1013_v39  ;;  %2090 = vmatmul.mubr.f32.vlgmr.msra.gmra.mxu1 %v1073_v48  ;;  %v1184_v49 = vmul.f32 %v2984_v59, %v2420_v1 }
 0x48d   : >> { %2128 = vmatpush3.msra.mxu1 %v2259_v52  ;;  %2159 = vmatprep.mubr.msk.f32.mxu1 %vm2360_vm0, %v2359_v9 }
 0x48e   : >> { %2245 = vrcp.f32 %v1007_v50  ;;  %2129 = vmatprep.subr.mxu1 %v2359_v9  ;;  %v1047_v56 = vadd.f32 %v1046_v51, %v2959_v14  ;;  %v1177_v14 = vadd.f32 %v1175_v26, %v2420_v1 }
 0x48f   : >> { %2130 = vmatpush3.msra.mxu1 %v2260_v8 }
 0x490   : >> { %2131 = vmatprep.subr.mxu1 %v2359_v9  ;;  %v1154_v39 = vrot.slane %v1047_v56, 2  ;;  %v1179_v38 = vrot.slane %v1177_v14, 4  ;;  %v1194_v52 = vmul.f32 %v1047_v56, %v2425_v2 }
 0x491   : >> { %2132 = vmatpush3.msra.mxu1 %v2261_v10 }
 0x492   : >> { %2133 = vmatprep.subr.mxu1 %v2359_v9  ;;  %v1156_v29 = vadd.f32 %v1154_v39, %v2984_v59 }
 0x493   : >> { %2134 = vmatpush3.msra.mxu1 %v2262_v12 }
 0x494   : >> { %2135 = vmatprep.subr.mxu1 %v2359_v9  ;;  %v1158_v47 = vrot.slane %v1156_v29, 6 }
 0x495   : >> { %2136 = vmatpush3.msra.mxu1 %v2263_v13 }
 0x496   : >> { %2137 = vmatprep.subr.mxu1 %v2359_v9 }
 0x497   : >> { %2138 = vmatpush3.msra.mxu1 %v2264_v15 }
 0x498   : >> { %2139 = vmatprep.subr.mxu1 %v2359_v9 }
 0x499   : >> { %2140 = vmatpush3.msra.mxu1 %v2265_v16  ;;  %v1196_v16 = vrot.slane %v1194_v52, 1 }
 0x49a   : >> { %2141 = vmatprep.subr.mxu1 %v2359_v9 }
 0x49b   : >> { %v2246_v17 = vpop.eup %2245  ;;  %2142 = vmatpush3.msra.mxu1 %v2266_v18 }
 0x49c   : >> { %v1538_v19 = vrot.slane %v2246_v17, 4  ;;  %2143 = vmatprep.subr.mxu1 %v2359_v9 }
 0x49d   : >> { %2144 = vmatpush3.msra.mxu1 %v2267_v20 }
 0x49e   : >> { %v3031_v21 = vsel %vm1555_vm9, %v2940_v11, %v1538_v19  ;;  %2145 = vmatprep.subr.mxu1 %v2359_v9  ;;  %v2270_v11 = vld [vmem:[%s3148_s0 + $0x20] sm:$0xff] }
 0x49f   : >> { %2146 = vmatpush3.msra.mxu1 %v2268_v22 }
 0x4a0   : >> { %2147 = vmatprep.subr.mxu1 %v2359_v9 }
 0x4a1   : >> { %2148 = vmatpush3.msra.mxu1 %v2269_v24 }
 0x4a2   : >> { %2149 = vmatprep.subr.mxu1 %v2359_v9 }
 0x4a3   : >> { %2150 = vmatpush3.msra.mxu1 %v2270_v11 }
 0x4a4   : >> { %2151 = vmatprep.subr.mxu1 %v2359_v9 }
 0x4a5   : >> { %2152 = vmatpush3.msra.mxu1 %v2271_v25 }
 0x4a6   : >> { %2153 = vmatprep.subr.mxu1 %v2359_v9 }
 0x4a7   : >> { %2154 = vmatpush3.msra.mxu1 %v2272_v33 }
 0x4a8   : >> { %2155 = vmatprep.subr.mxu1 %v2359_v9 }
 0x4a9   : >> { %2156 = vmatpush3.msra.mxu1 %v2273_v54 }
 0x4aa   : >> { %2157 = vmatprep.subr.mxu1 %v2359_v9 }
 0x4ab   : >> { %2158 = vmatpush3.msra.mxu1 %v2274_v28 }
 0x54c   : >> { %v1141_v35 = vpop.f32.mrf.mxu1 }
 0x54d   : >> { %v1142_v62 = vadd.f32 %v1731_v6, %v1141_v35 }
 0x54e   : >> { %v2091_v5 = vpop.f32.mrf.mxu1 }
 0x54f   : >> { %v1146_v7 = vrot.slane %v1142_v62, 6 }
 0x551   : >> { %v1148_v4 = vmul.f32 %v1146_v7, %v2420_v1 }
 0x553   : >> { %v1150_v41 = vrot.slane %v1148_v4, 2 }
 0x555   : >> { %v1152_v43 = vadd.f32 %v1150_v41, %v1071_v30 }
 0x557   : >> { %v1160_v31 = vsub.f32 %v1152_v43, %v1158_v47  ;;  %vm1167_vm10 = vcmp.ge.f32.partialorder %v1152_v43, %v1158_v47 }
 0x558   : >> { %v1733_v34 = vsel %vm1167_vm10, 1.0, %v2359_v9 }
 0x559   : >> { %v1732_v37 = vmul.f32 -1.442695, %v1160_v31  ;;  %v1170_v23 = vsub.f32 1.0, %v1733_v34  ;;  %v1181_v60 = vmul.f32 %v1733_v34, %v1179_v38  ;;  %v1206_v61 = vmul.f32 %v1733_v34, %v2664_v44 }
 0x55a   : >> { %v1185_v3 = vmul.f32 %v1733_v34, %v2668_v46 }
 0x55b   : >> { %2247 = vpow2.f32 %v1732_v37  ;;  %v1182_v42 = vmul.f32 %v1170_v23, %v1152_v43  ;;  %v1208_v45 = vrot.slane %v1206_v61, 6  ;;  %v1211_v48 = vmul.f32 %v1170_v23, %v2987_v0 }
 0x55c   : >> { %v1187_v50 = vrot.slane %v1185_v3, 2 }
 0x55d   : >> { %v1183_v51 = vadd.f32 %v1182_v42, %v1181_v60  ;;  %v1210_v8 = vadd.f32 %v1208_v45, %v1205_v40  ;;  %v1212_v10 = vmul.f32 %v1211_v48, %v2678_v53 }
 0x55e   : >> { %v1189_v12 = vadd.f32 %v1187_v50, %v1184_v49 }
 0x55f   : >> { %v1191_v13 = vrot.slane %v1183_v51, 1  ;;  %v1213_v32 = vadd.f32 %v1733_v34, %v1212_v10  ;;  %v1328_v63 = vrot.slane %v1183_v51, 5  ;;  %v1222_v55 = vrot.slane %v1183_v51, 7 }
 0x560   : >> { %v1362_v61 = vmul.f32 %v1210_v8, %v2425_v2  ;;  %v1341_v48 = vmul.f32 %v1189_v12, %v2420_v1 }
 0x561   : >> { %v1193_v15 = vmul.f32 %v1191_v13, %v2420_v1  ;;  %v1218_v17 = vrot.slane %v1213_v32, 6  ;;  %v1330_v58 = vmul.f32 %v1328_v63, %v2420_v1  ;;  %v1224_v35 = vmul.f32 %v1222_v55, %v2420_v1 }
 0x563   : >> { %v1198_v18 = vsub.f32 %v1193_v15, %v1196_v16  ;;  %v1220_v19 = vadd.f32 %v1218_v17, %v1210_v8  ;;  %v1226_v7 = vrot.slane %v1224_v35, 1  ;;  %v1332_v4 = vrot.slane %v1330_v58, 7 }
 0x565   : >> { %v1199_v0 = vadd.f32 %v1198_v18, %v2694_v27  ;;  %v1221_v59 = vmul.f32 0.5, %v1220_v19 }
 0x567   : >> { %v1201_v20 = vrot.slane %v1199_v0, 7  ;;  %v1230_v22 = vrot.slane %v1221_v59, 2 }
 0x568   : >> { %v2248_v24 = vpop.eup %2247 }
 0x569   : >> { %v1164_v11 = vadd.f32 1.0, %v2248_v24  ;;  %v1203_v25 = vmul.f32 %v1201_v20, %v1170_v23  ;;  %2125 = vmatmul.mubr.f32.vlgmr.msra.gmra.mxu0 %v1230_v22 }
 0x56b   : >> { %2249 = vrcp.f32 %v1164_v11  ;;  %v1204_v6 = vadd.f32 %v1203_v25, %v1047_v56  ;;  %v1334_v56 = vadd.f32 %v1332_v4, %v2420_v1 }
 0x56d   : >> { %v1311_v5 = vrot.slane %v1204_v6, 2  ;;  %v1336_v31 = vrot.slane %v1334_v56, 4  ;;  %v1351_v51 = vmul.f32 %v1204_v6, %v2425_v2 }
 0x56f   : >> { %v1313_v30 = vadd.f32 %v1311_v5, %v1189_v12  ;;  %v1353_v17 = vrot.slane %v1351_v51, 1 }
 0x571   : >> { %v1315_v43 = vrot.slane %v1313_v30, 6 }
 0x578   : >> { %v2250_v33 = vpop.eup %2249 }
 0x579   : >> { %v1541_v54 = vrot.slane %v2250_v33, 3 }
 0x57b   : >> { %v3084_v28 = vsel %vm1557_vm11, %v3031_v21, %v1541_v54  ;;  %v1228_v21 = vadd.f32 %v1226_v7, %v2420_v1 }
 0x629   : >> { %v1298_v62 = vpop.f32.mrf.mxu0 }
 0x62a   : >> { %v1299_v39 = vadd.f32 %v1735_v57, %v1298_v62  ;;  %v1739_v62 = vld [vmem:[%s2648_s26 + $0x7] sm:$0x1]  ;;  %s1563_s26 = scalar_lea.vmem %s2411_s27, %s1711_s25  ;;  %s2361_s25 = smov (%p242_p5), [#allocation2]  }
 0x62b   : >> { %v2126_v36 = vpop.f32.mrf.mxu0  ;;  %s1592_s20 = sshll.u32 (%p242_p5), %s2361_s25, 4  ;;  %s1593_s20 = int_to_ptr.vmem [resolvable:$true] %s1592_s20 }
 0x62c   : >> { %v1303_v26 = vrot.slane %v1299_v39, 6  ;;  %s2275_s21 = scalar_lea.vmem (%p242_p5), %s1593_s20, 128  ;;  %p2282_p10 = scmp.lt.s32.totalorder (%p242_p5), %s1593_s20, %s1593_s20 }
 0x62d   : > { %p2276_p7 = scmp.ne.s32.totalorder (%p242_p5), %s1593_s20, %s2275_s21  ;;  %p2283_p11 = scmp.lt.s32.totalorder (%p242_p5), %s2275_s21, %s2275_s21 }
 0x62e   : >> { %v1305_v29 = vmul.f32 %v1303_v26, %v2420_v1 }
 0x62f   : > { %p2277_p8 = pnand (%p242_p5), %p2276_p7, %p2166_p6  ;;  %p2284_p12 = por (%p242_p5), %p2283_p11, %p2282_p10 }
 0x630   : >> { %v1307_v41 = vrot.slane %v1305_v29, 2 }
 0x631   : > { %p2278_p9 = pneg (%p242_p5), %p2277_p8 }
 0x632   : >> { %v1309_v14 = vadd.f32 %v1307_v41, %v1228_v21 }
 0x633   : > { %p2285_p13 = pnand (%p242_p5), %p2284_p12, %p2278_p9 }
 0x634   : >> { %v1317_v47 = vsub.f32 %v1309_v14, %v1315_v43  ;;  %vm1324_vm12 = vcmp.ge.f32.partialorder %v1309_v14, %v1315_v43 }
 0x635   : >> { %v1737_v38 = vsel %vm1324_vm12, 1.0, %v2359_v9 }
 0x636   : >> { %v1736_v34 = vmul.f32 -1.442695, %v1317_v47  ;;  %v1327_v37 = vsub.f32 1.0, %v1737_v38  ;;  %v1338_v23 = vmul.f32 %v1737_v38, %v1336_v31  ;;  %v1363_v60 = vmul.f32 %v1737_v38, %v2664_v44 }
 0x637   : >> { %v1342_v40 = vmul.f32 %v1737_v38, %v2668_v46 }
 0x638   : >> { %2251 = vpow2.f32 %v1736_v34  ;;  %v1339_v3 = vmul.f32 %v1327_v37, %v1309_v14  ;;  %v1365_v42 = vrot.slane %v1363_v60, 6  ;;  %v1368_v45 = vmul.f32 %v1327_v37, %v1213_v32 }
 0x639   : >> { %v1344_v49 = vrot.slane %v1342_v40, 2 }
 0x63a   : >> { %v1340_v50 = vadd.f32 %v1339_v3, %v1338_v23  ;;  %v1367_v52 = vadd.f32 %v1365_v42, %v1362_v61  ;;  %v1369_v10 = vmul.f32 %v1368_v45, %v2678_v53 }
 0x63b   : >> { %v1346_v13 = vadd.f32 %v1344_v49, %v1341_v48 }
 0x63c   : >> { %v1348_v15 = vrot.slane %v1340_v50, 1  ;;  %v1370_v16 = vadd.f32 %v1737_v38, %v1369_v10  ;;  %v1485_v58 = vrot.slane %v1340_v50, 5  ;;  %v1379_v35 = vrot.slane %v1340_v50, 7 }
 0x63d   : >> { %v1498_v60 = vmul.f32 %v1346_v13, %v2420_v1  ;;  %v1519_v45 = vmul.f32 %v1367_v52, %v2425_v2 }
 0x63e   : >> { %v1350_v8 = vmul.f32 %v1348_v15, %v2420_v1  ;;  %v1375_v18 = vrot.slane %v1370_v16, 6  ;;  %v1487_v39 = vmul.f32 %v1485_v58, %v2420_v1  ;;  %v1381_v5 = vmul.f32 %v1379_v35, %v2420_v1 }
 0x640   : >> { %v1355_v19 = vsub.f32 %v1350_v8, %v1353_v17  ;;  %v1377_v0 = vadd.f32 %v1375_v18, %v1367_v52  ;;  %v1383_v4 = vrot.slane %v1381_v5, 1 }
 0x642   : >> { %v1356_v32 = vadd.f32 %v1355_v19, %v2694_v27  ;;  %v1378_v59 = vmul.f32 0.5, %v1377_v0  ;;  %v1385_v21 = vadd.f32 %v1383_v4, %v2420_v1 }
 0x644   : >> { %v1358_v12 = vrot.slane %v1356_v32, 7  ;;  %v1387_v20 = vrot.slane %v1378_v59, 2 }
 0x645   : >> { %v2252_v22 = vpop.eup %2251 }
 0x646   : >> { %v1321_v24 = vadd.f32 1.0, %v2252_v22  ;;  %v1360_v11 = vmul.f32 %v1358_v12, %v1327_v37  ;;  %2160 = vmatmul.mubr.f32.vlgmr.msra.gmra.mxu1 %v1387_v20 }
 0x648   : >> { %2253 = vrcp.f32 %v1321_v24  ;;  %v1361_v25 = vadd.f32 %v1360_v11, %v1204_v6  ;;  %v1489_v6 = vrot.slane %v1487_v39, 7 }
 0x64a   : >> { %v1468_v33 = vrot.slane %v1361_v25, 2 }
 0x64c   : >> { %v1470_v54 = vadd.f32 %v1468_v33, %v1346_v13 }
 0x64e   : >> { %v1472_v14 = vrot.slane %v1470_v54, 6 }
 0x655   : >> { %v2254_v63 = vpop.eup %2253 }
 0x656   : >> { %v1544_v55 = vrot.slane %v2254_v63, 2 }
 0x658   : >> { %v1560_v57 = vsel %vm1559_vm13, %v3084_v28, %v1544_v55  ;;  %v1491_v28 = vadd.f32 %v1489_v6, %v2420_v1 }
 0x65a   : >> { %v1493_v47 = vrot.slane %v1491_v28, 4 }
 0x706   : >> { %v1455_v36 = vpop.f32.mrf.mxu1 }
 0x707   : >> { %v1456_v7 = vadd.f32 %v1739_v62, %v1455_v36 }
 0x708   : >> { %v2161_v26 = vpop.f32.mrf.mxu1 }
 0x709   : >> { %v1460_v29 = vrot.slane %v1456_v7, 6 }
 0x70b   : >> { %v1462_v30 = vmul.f32 %v1460_v29, %v2420_v1 }
 0x70d   : >> { %v1464_v41 = vrot.slane %v1462_v30, 2 }
 0x70f   : >> { %v1466_v56 = vadd.f32 %v1464_v41, %v1385_v21 }
 0x711   : >> { %v1474_v43 = vsub.f32 %v1466_v56, %v1472_v14  ;;  %vm1481_vm14 = vcmp.ge.f32.partialorder %v1466_v56, %v1472_v14 }
 0x712   : >> { %v1741_v31 = vsel %vm1481_vm14, 1.0, %v2359_v9  ;;  %v1508_v9 = vmul.f32 %v1361_v25, %v2425_v2 }
 0x713   : >> { %v1740_v38 = vmul.f32 -1.442695, %v1474_v43  ;;  %v1484_v34 = vsub.f32 1.0, %v1741_v31  ;;  %v1495_v37 = vmul.f32 %v1741_v31, %v1493_v47  ;;  %v1499_v23 = vmul.f32 %v1741_v31, %v2668_v46 }
 0x714   : >> { %v1520_v61 = vmul.f32 %v1741_v31, %v2664_v44  ;;  %v1510_v17 = vrot.slane %v1508_v9, 1 }
 0x715   : >> { %2255 = vpow2.f32 %v1740_v38  ;;  %v1496_v40 = vmul.f32 %v1484_v34, %v1466_v56  ;;  %v1501_v3 = vrot.slane %v1499_v23, 2  ;;  %v1525_v42 = vmul.f32 %v1484_v34, %v1370_v16 }
 0x716   : >> { %v1522_v48 = vrot.slane %v1520_v61, 6 }
 0x717   : >> { %v1497_v49 = vadd.f32 %v1496_v40, %v1495_v37   ;;  %v1503_v50 = vadd.f32 %v1501_v3, %v1498_v60  ;;  %v1526_v51 = vmul.f32 %v1525_v42, %v2678_v53 }
 0x718   : >> { %v1524_v10 = vadd.f32 %v1522_v48, %v1519_v45 }
 0x719   : >> { %v1505_v15 = vrot.slane %v1497_v49, 1  ;;  %v1527_v46 = vadd.f32 %v1741_v31, %v1526_v51   ;;  %v1566_v13 = vrot.slane %v1503_v50, 6   ;;  %v3158_v3 = vmov %v1497_v49  ;;  %1571 = vst [vmem:[#allocation2] sm:$0x1] (%p242_p5), %v1497_v49 }
 0x71a   : >> { %v1569_v44 = vrot.slane %v1524_v10, 2  }
 0x71b   : >> { %v1507_v8 = vmul.f32 %v1505_v15, %v2420_v1  ;;  %v3156_v5 = vmov %v1566_v13  ;;  %v3157_v4 = vmov %v1527_v46  ;;  %1572 = vst [vmem:[#allocation2 + $0x1] sm:$0x1] (%p242_p5), %v1527_v46  ;;  %1573 = vst [vmem:[#allocation2 + $0x2] sm:$0x1] (%p242_p5), %v1566_v13 }
 0x71c   : >> { %v3154_v7 = vmov %v1569_v44  ;;  %1575 = vst [vmem:[#allocation2 + $0x4] sm:$0x1] (%p242_p5), %v1569_v44 }
 0x71d   : >> { %v1512_v16 = vsub.f32 %v1507_v8, %v1510_v17 }
 0x71f   : >> { %v1513_v52 = vadd.f32 %v1512_v16, %v2694_v27 }
 0x721   : >> { %v1515_v18 = vrot.slane %v1513_v52, 7 }
 0x722   : >> { %v2256_v19 = vpop.eup %2255 }
 0x723   : >> { %v1478_v0 = vadd.f32 1.0, %v2256_v19  ;;  %v1517_v32 = vmul.f32 %v1515_v18, %v1484_v34 }
 0x725   : >> { %2257 = vrcp.f32 %v1478_v0  ;;  %v1518_v59 = vadd.f32 %v1517_v32, %v1361_v25  }
 0x727   : >> { %v3155_v6 = vmov %v1518_v59  ;;  %1574 = vst [vmem:[#allocation2 + $0x3] sm:$0x1] (%p242_p5), %v1518_v59 }
 0x732   : >> { %v2258_v53 = vpop.eup %2257  ;;  %244 = sbr.rel (!%p242_p5) target bundleno = 26 (0x1a), region = 95 }
 0x733   : >> { %v1547_v12 = vrot.slane %v2258_v53, 1 }
 0x735   : >> { %v1562_v20 = vsel %vm1561_vm15, %v1560_v57, %v1547_v12 }
 0x736   : >> { %1564 = vst [vmem:[%s1563_s26] sm:$0xff] %v1562_v20 }
 0x737   : > { %2288 = shalt.err (!%p2285_p13)
}
 0x738   : > { %2163 = dma.vmem_to_hbm [thread:$0]  (%p2166_p6), %s1593_s20, 128, %s3153_s5, [#allocation3]  }
 0x739   : > { %2328 = dma.done.wait (%p2166_p6), [#allocation3], 128  }
 0x73a   : > { %2330 = vsyncadd (%p2166_p6), [#allocation3], 4294967168 }
 0x73b PF: > { %s17_s18 = sadd.s32 1, %s2333_s18  }
 0x73c   : > { %p14_p0 = scmp.ge.s32.totalorder %s17_s18, 4  }
 0x73e   :  { %16 = sbr.rel (!%p14_p0) target bundleno = 1 (0x1), region = 106 }
 0x743   :  { %1613 = vsyncpa [#allocation3], 1 }
 0x744   :  { %1615 = vsyncpa [#allocation3 + $0x1], 1 }

</bundles_post_ra>
